<compile_context>
chip_gen: v5e
topology: v5e:2x2
jax: 0.10.0
libtpu: 0.0.40
codegen_flags: <defaults>
</compile_context>

<pallas_src>
import functools

import jax
import jax.numpy as jnp
from jax.experimental import pallas as pl
from jax.experimental.pallas import tpu as pltpu


def _round_up(x: int, m: int) -> int:
    return ((x + m - 1) // m) * m


def lstm_kernel(gx_ref, wh_ref, out_ref, *, seq_len, hidden_pad):
    """Whole LSTM recurrence in one kernel invocation.

    gx_ref : (L, Np, 4*Hp)  precomputed input projections X_t @ W_x + b (padded)
    wh_ref : (Hp, 4*Hp)     hidden->gates weights, gate-lane-padded
    out_ref: (Np, Hp)       final hidden state H_T (padded)
    """
    Hp = hidden_pad

    def gate_math(gates, c_prev):
        # Each gate occupies its own 128-lane-aligned block -> free static views.
        i_g = jax.nn.sigmoid(gates[:, 0 * Hp:1 * Hp])
        f_g = jax.nn.sigmoid(gates[:, 1 * Hp:2 * Hp])
        o_g = jax.nn.sigmoid(gates[:, 2 * Hp:3 * Hp])
        g_g = jnp.tanh(gates[:, 3 * Hp:4 * Hp])
        c = f_g * c_prev + i_g * g_g
        h = o_g * jnp.tanh(c)
        return h, c

    # --- Peeled step 0: H_{-1} == 0 and C_{-1} == 0, so the recurrent matmul
    # and the forget-gate term vanish; gates are just the input projection.
    gates0 = gx_ref[0]
    i0 = jax.nn.sigmoid(gates0[:, 0 * Hp:1 * Hp])
    o0 = jax.nn.sigmoid(gates0[:, 2 * Hp:3 * Hp])
    g0 = jnp.tanh(gates0[:, 3 * Hp:4 * Hp])
    c = i0 * g0
    h = o0 * jnp.tanh(c)

    # --- Remaining steps: only the serial part H_{t-1} @ W_h + G_x[t].
    def step(t, carry):
        h, c = carry
        gates = jnp.dot(h, wh_ref[...],
                        preferred_element_type=jnp.float32) + gx_ref[t]
        return gate_math(gates, c)

    # Fully unroll short sequences so the LLO scheduler sees the whole chain.
    h, c = jax.lax.fori_loop(1, seq_len, step, (h, c),
                             unroll=True if seq_len <= 32 else False)
    out_ref[...] = h.astype(out_ref.dtype)


def lstm_forward(X, E_weight, W_weight, W_bias, *, hidden_size):
    """Pallas equivalent of SimpleLSTM.forward.

    X        : (N, L) int32 token ids
    E_weight : (vocab, embed)
    W_weight : (4H, H + E)   (PyTorch Linear layout: (out, in))
    W_bias   : (4H,)
    returns  : (N, H) float32 H_T
    """
    N, L = X.shape
    H = hidden_size
    if L == 0:  # degenerate: module returns the zero-initialised hidden state
        return jnp.zeros((N, H), jnp.float32)

    Hp = _round_up(max(H, 1), 128)   # lane-aligned per-gate block width
    Np = _round_up(max(N, 1), 8)     # sublane-aligned batch

    # Split the concatenated-input Linear into hidden / input blocks.
    W_t = W_weight.T.astype(jnp.float32)        # (H + E, 4H)
    W_h = W_t[:H, :]                            # (H, 4H)
    W_x = W_t[H:, :]                            # (E, 4H)

    # --- Hoisted input projection: one batched XLA matmul over all steps ----
    x_emb = E_weight[X].astype(jnp.float32)                                  # (N, L, E)
    gx = jnp.einsum("nle,eg->lng", x_emb, W_x) + W_bias.astype(jnp.float32)  # (L, N, 4H)

    # --- Pad to lane-aligned gate layout: gate k lives in lanes [k*Hp, k*Hp+H) ---
    gx_pad = jnp.zeros((L, Np, 4, Hp), jnp.float32)
    gx_pad = gx_pad.at[:, :N, :, :H].set(gx.reshape(L, N, 4, H))
    gx_pad = gx_pad.reshape(L, Np, 4 * Hp)

    wh_pad = jnp.zeros((Hp, 4, Hp), jnp.float32)
    wh_pad = wh_pad.at[:H, :, :H].set(W_h.reshape(H, 4, H))
    wh_pad = wh_pad.reshape(Hp, 4 * Hp)

    kernel = functools.partial(lstm_kernel, seq_len=L, hidden_pad=Hp)

    out = pl.pallas_call(
        kernel,
        out_shape=jax.ShapeDtypeStruct((Np, Hp), jnp.float32),
        grid_spec=pltpu.PrefetchScalarGridSpec(
            num_scalar_prefetch=0,
            grid=(1,),   # single grid step; the time loop lives inside the kernel
            in_specs=[
                pl.BlockSpec((L, Np, 4 * Hp), lambda i: (0, 0, 0)),
                pl.BlockSpec((Hp, 4 * Hp), lambda i: (0, 0)),
            ],
            out_specs=pl.BlockSpec((Np, Hp), lambda i: (0, 0)),
        ),
        compiler_params=pltpu.CompilerParams(
            dimension_semantics=("arbitrary",),
        ),
    )(gx_pad, wh_pad)

    return out[:N, :H]


def lstm_forward_ref(X, E_weight, W_weight, W_bias, *, hidden_size):
    """Pure-JAX reference mirroring the PyTorch forward loop."""
    N, L = X.shape
    H = hidden_size
    C_t = jnp.zeros((N, H), jnp.float32)
    H_t = jnp.zeros((N, H), jnp.float32)
    for t in range(L):
        X_t = E_weight[X[:, t]].astype(jnp.float32)
        HX = jnp.concatenate([H_t, X_t], axis=1)
        gates = HX @ W_weight.T + W_bias
        I = jax.nn.sigmoid(gates[:, :H])
        F = jax.nn.sigmoid(gates[:, H:2 * H])
        O = jax.nn.sigmoid(gates[:, 2 * H:3 * H])
        G = jnp.tanh(gates[:, 3 * H:4 * H])
        C_t = F * C_t + I * G
        H_t = O * jnp.tanh(C_t)
    return H_t


if __name__ == "__main__":
    # Small shapes consistent with the module's forward.
    vocab_size = 50
    hidden_size = 32
    embed_size = 16
    N, L = 8, 8

    key = jax.random.PRNGKey(0)
    k_x, k_e, k_w, k_b = jax.random.split(key, 4)

    # Deterministic parameter init (xavier_uniform semantics for weights).
    def xavier_uniform(k, shape):
        fan_in, fan_out = shape[1], shape[0]
        bound = (6.0 / (fan_in + fan_out)) ** 0.5
        return jax.random.uniform(k, shape, jnp.float32, -bound, bound)

    E_weight = xavier_uniform(k_e, (vocab_size, embed_size))
    W_weight = xavier_uniform(k_w, (4 * hidden_size, hidden_size + embed_size))
    b_bound = 1.0 / ((hidden_size + embed_size) ** 0.5)
    W_bias = jax.random.uniform(k_b, (4 * hidden_size,), jnp.float32,
                                -b_bound, b_bound)

    X = jax.random.randint(k_x, (N, L), 0, vocab_size, dtype=jnp.int32)

    out = lstm_forward(X, E_weight, W_weight, W_bias, hidden_size=hidden_size)
    out = jax.block_until_ready(out)

    ref = lstm_forward_ref(X, E_weight, W_weight, W_bias, hidden_size=hidden_size)
    assert out.shape == (N, hidden_size)
    assert jnp.allclose(out, ref, atol=1e-5, rtol=1e-5), "mismatch vs reference"

    print("KERNEL_OK")
</pallas_src>

<mosaic_0001>
module attributes {stable_mosaic.version = 11 : i64} {
  func.func @lstm_kernel(%arg0: i32, %arg1: memref<8x8x512xf32, #tpu.memory_space<vmem>>, %arg2: memref<128x512xf32, #tpu.memory_space<vmem>>, %arg3: memref<8x128xf32, #tpu.memory_space<vmem>>) attributes {dimension_semantics = [#tpu.dimension_semantics<arbitrary>], iteration_bounds = array<i64: 1>, scalar_prefetch = 0 : i64, scratch_operands = 0 : i64, tpu.core_type = #tpu.core_type<tc>, window_params = [{pipeline_mode = #tpu.pipeline_mode<synchronous>, transform_indices = @transform_0, window_bounds = array<i64: 8, 8, 512>}, {pipeline_mode = #tpu.pipeline_mode<synchronous>, transform_indices = @transform_1, window_bounds = array<i64: 128, 512>}, {pipeline_mode = #tpu.pipeline_mode<synchronous>, transform_indices = @transform_2, window_bounds = array<i64: 8, 128>}]} {
    %c0 = arith.constant 0 : index
    %c0_0 = arith.constant 0 : index
    %c0_1 = arith.constant 0 : index
    %0 = vector.load %arg1[%c0, %c0_0, %c0_1] : memref<8x8x512xf32, #tpu.memory_space<vmem>>, vector<1x8x512xf32>
    %1 = vector.shape_cast %0 : vector<1x8x512xf32> to vector<8x512xf32>
    %2 = vector.extract_strided_slice %1 {offsets = [0, 0], sizes = [8, 128], strides = [1, 1]} : vector<8x512xf32> to vector<8x128xf32>
    %3 = arith.negf %2 : vector<8x128xf32>
    %4 = math.exp %3 : vector<8x128xf32>
    %cst = arith.constant 1.000000e+00 : f32
    %5 = vector.broadcast %cst : f32 to vector<8x128xf32>
    %6 = arith.addf %5, %4 : vector<8x128xf32>
    %7 = arith.divf %5, %6 : vector<8x128xf32>
    %8 = vector.extract_strided_slice %1 {offsets = [0, 256], sizes = [8, 128], strides = [1, 1]} : vector<8x512xf32> to vector<8x128xf32>
    %9 = arith.negf %8 : vector<8x128xf32>
    %10 = math.exp %9 : vector<8x128xf32>
    %cst_2 = arith.constant 1.000000e+00 : f32
    %11 = vector.broadcast %cst_2 : f32 to vector<8x128xf32>
    %12 = arith.addf %11, %10 : vector<8x128xf32>
    %13 = arith.divf %11, %12 : vector<8x128xf32>
    %14 = vector.extract_strided_slice %1 {offsets = [0, 384], sizes = [8, 128], strides = [1, 1]} : vector<8x512xf32> to vector<8x128xf32>
    %15 = math.tanh %14 : vector<8x128xf32>
    %16 = arith.mulf %7, %15 : vector<8x128xf32>
    %17 = math.tanh %16 : vector<8x128xf32>
    %18 = arith.mulf %13, %17 : vector<8x128xf32>
    %c1_i32 = arith.constant 1 : i32
    %c0_3 = arith.constant 0 : index
    %c0_4 = arith.constant 0 : index
    %19 = vector.load %arg2[%c0_3, %c0_4] : memref<128x512xf32, #tpu.memory_space<vmem>>, vector<128x512xf32>
    %cst_5 = arith.constant dense<0.000000e+00> : vector<8x512xf32>
    %20 = tpu.matmul %18, %19, %cst_5 {dimension_numbers = #tpu.dot_dimension_numbers<[1], [0], [0], [1], [0, 0, 1, 1], [], []>} : vector<8x128xf32>, vector<128x512xf32>, vector<8x512xf32> -> vector<8x512xf32>
    %21 = arith.index_cast %c1_i32 : i32 to index
    %c0_6 = arith.constant 0 : index
    %c0_7 = arith.constant 0 : index
    %22 = vector.load %arg1[%21, %c0_6, %c0_7] : memref<8x8x512xf32, #tpu.memory_space<vmem>>, vector<1x8x512xf32>
    %23 = vector.shape_cast %22 : vector<1x8x512xf32> to vector<8x512xf32>
    %24 = arith.addf %20, %23 : vector<8x512xf32>
    %25 = vector.extract_strided_slice %24 {offsets = [0, 0], sizes = [8, 128], strides = [1, 1]} : vector<8x512xf32> to vector<8x128xf32>
    %26 = arith.negf %25 : vector<8x128xf32>
    %27 = math.exp %26 : vector<8x128xf32>
    %cst_8 = arith.constant 1.000000e+00 : f32
    %28 = vector.broadcast %cst_8 : f32 to vector<8x128xf32>
    %29 = arith.addf %28, %27 : vector<8x128xf32>
    %30 = arith.divf %28, %29 : vector<8x128xf32>
    %31 = vector.extract_strided_slice %24 {offsets = [0, 128], sizes = [8, 128], strides = [1, 1]} : vector<8x512xf32> to vector<8x128xf32>
    %32 = arith.negf %31 : vector<8x128xf32>
    %33 = math.exp %32 : vector<8x128xf32>
    %cst_9 = arith.constant 1.000000e+00 : f32
    %34 = vector.broadcast %cst_9 : f32 to vector<8x128xf32>
    %35 = arith.addf %34, %33 : vector<8x128xf32>
    %36 = arith.divf %34, %35 : vector<8x128xf32>
    %37 = vector.extract_strided_slice %24 {offsets = [0, 256], sizes = [8, 128], strides = [1, 1]} : vector<8x512xf32> to vector<8x128xf32>
    %38 = arith.negf %37 : vector<8x128xf32>
    %39 = math.exp %38 : vector<8x128xf32>
    %cst_10 = arith.constant 1.000000e+00 : f32
    %40 = vector.broadcast %cst_10 : f32 to vector<8x128xf32>
    %41 = arith.addf %40, %39 : vector<8x128xf32>
    %42 = arith.divf %40, %41 : vector<8x128xf32>
    %43 = vector.extract_strided_slice %24 {offsets = [0, 384], sizes = [8, 128], strides = [1, 1]} : vector<8x512xf32> to vector<8x128xf32>
    %44 = math.tanh %43 : vector<8x128xf32>
    %45 = arith.mulf %36, %16 : vector<8x128xf32>
    %46 = arith.mulf %30, %44 : vector<8x128xf32>
    %47 = arith.addf %45, %46 : vector<8x128xf32>
    %48 = math.tanh %47 : vector<8x128xf32>
    %49 = arith.mulf %42, %48 : vector<8x128xf32>
    %c2_i32 = arith.constant 2 : i32
    %c0_11 = arith.constant 0 : index
    %c0_12 = arith.constant 0 : index
    %50 = vector.load %arg2[%c0_11, %c0_12] : memref<128x512xf32, #tpu.memory_space<vmem>>, vector<128x512xf32>
    %cst_13 = arith.constant dense<0.000000e+00> : vector<8x512xf32>
    %51 = tpu.matmul %49, %50, %cst_13 {dimension_numbers = #tpu.dot_dimension_numbers<[1], [0], [0], [1], [0, 0, 1, 1], [], []>} : vector<8x128xf32>, vector<128x512xf32>, vector<8x512xf32> -> vector<8x512xf32>
    %52 = arith.index_cast %c2_i32 : i32 to index
    %c0_14 = arith.constant 0 : index
    %c0_15 = arith.constant 0 : index
    %53 = vector.load %arg1[%52, %c0_14, %c0_15] : memref<8x8x512xf32, #tpu.memory_space<vmem>>, vector<1x8x512xf32>
    %54 = vector.shape_cast %53 : vector<1x8x512xf32> to vector<8x512xf32>
    %55 = arith.addf %51, %54 : vector<8x512xf32>
    %56 = vector.extract_strided_slice %55 {offsets = [0, 0], sizes = [8, 128], strides = [1, 1]} : vector<8x512xf32> to vector<8x128xf32>
    %57 = arith.negf %56 : vector<8x128xf32>
    %58 = math.exp %57 : vector<8x128xf32>
    %cst_16 = arith.constant 1.000000e+00 : f32
    %59 = vector.broadcast %cst_16 : f32 to vector<8x128xf32>
    %60 = arith.addf %59, %58 : vector<8x128xf32>
    %61 = arith.divf %59, %60 : vector<8x128xf32>
    %62 = vector.extract_strided_slice %55 {offsets = [0, 128], sizes = [8, 128], strides = [1, 1]} : vector<8x512xf32> to vector<8x128xf32>
    %63 = arith.negf %62 : vector<8x128xf32>
    %64 = math.exp %63 : vector<8x128xf32>
    %cst_17 = arith.constant 1.000000e+00 : f32
    %65 = vector.broadcast %cst_17 : f32 to vector<8x128xf32>
    %66 = arith.addf %65, %64 : vector<8x128xf32>
    %67 = arith.divf %65, %66 : vector<8x128xf32>
    %68 = vector.extract_strided_slice %55 {offsets = [0, 256], sizes = [8, 128], strides = [1, 1]} : vector<8x512xf32> to vector<8x128xf32>
    %69 = arith.negf %68 : vector<8x128xf32>
    %70 = math.exp %69 : vector<8x128xf32>
    %cst_18 = arith.constant 1.000000e+00 : f32
    %71 = vector.broadcast %cst_18 : f32 to vector<8x128xf32>
    %72 = arith.addf %71, %70 : vector<8x128xf32>
    %73 = arith.divf %71, %72 : vector<8x128xf32>
    %74 = vector.extract_strided_slice %55 {offsets = [0, 384], sizes = [8, 128], strides = [1, 1]} : vector<8x512xf32> to vector<8x128xf32>
    %75 = math.tanh %74 : vector<8x128xf32>
    %76 = arith.mulf %67, %47 : vector<8x128xf32>
    %77 = arith.mulf %61, %75 : vector<8x128xf32>
    %78 = arith.addf %76, %77 : vector<8x128xf32>
    %79 = math.tanh %78 : vector<8x128xf32>
    %80 = arith.mulf %73, %79 : vector<8x128xf32>
    %c3_i32 = arith.constant 3 : i32
    %c0_19 = arith.constant 0 : index
    %c0_20 = arith.constant 0 : index
    %81 = vector.load %arg2[%c0_19, %c0_20] : memref<128x512xf32, #tpu.memory_space<vmem>>, vector<128x512xf32>
    %cst_21 = arith.constant dense<0.000000e+00> : vector<8x512xf32>
    %82 = tpu.matmul %80, %81, %cst_21 {dimension_numbers = #tpu.dot_dimension_numbers<[1], [0], [0], [1], [0, 0, 1, 1], [], []>} : vector<8x128xf32>, vector<128x512xf32>, vector<8x512xf32> -> vector<8x512xf32>
    %83 = arith.index_cast %c3_i32 : i32 to index
    %c0_22 = arith.constant 0 : index
    %c0_23 = arith.constant 0 : index
    %84 = vector.load %arg1[%83, %c0_22, %c0_23] : memref<8x8x512xf32, #tpu.memory_space<vmem>>, vector<1x8x512xf32>
    %85 = vector.shape_cast %84 : vector<1x8x512xf32> to vector<8x512xf32>
    %86 = arith.addf %82, %85 : vector<8x512xf32>
    %87 = vector.extract_strided_slice %86 {offsets = [0, 0], sizes = [8, 128], strides = [1, 1]} : vector<8x512xf32> to vector<8x128xf32>
    %88 = arith.negf %87 : vector<8x128xf32>
    %89 = math.exp %88 : vector<8x128xf32>
    %cst_24 = arith.constant 1.000000e+00 : f32
    %90 = vector.broadcast %cst_24 : f32 to vector<8x128xf32>
    %91 = arith.addf %90, %89 : vector<8x128xf32>
    %92 = arith.divf %90, %91 : vector<8x128xf32>
    %93 = vector.extract_strided_slice %86 {offsets = [0, 128], sizes = [8, 128], strides = [1, 1]} : vector<8x512xf32> to vector<8x128xf32>
    %94 = arith.negf %93 : vector<8x128xf32>
    %95 = math.exp %94 : vector<8x128xf32>
    %cst_25 = arith.constant 1.000000e+00 : f32
    %96 = vector.broadcast %cst_25 : f32 to vector<8x128xf32>
    %97 = arith.addf %96, %95 : vector<8x128xf32>
    %98 = arith.divf %96, %97 : vector<8x128xf32>
    %99 = vector.extract_strided_slice %86 {offsets = [0, 256], sizes = [8, 128], strides = [1, 1]} : vector<8x512xf32> to vector<8x128xf32>
    %100 = arith.negf %99 : vector<8x128xf32>
    %101 = math.exp %100 : vector<8x128xf32>
    %cst_26 = arith.constant 1.000000e+00 : f32
    %102 = vector.broadcast %cst_26 : f32 to vector<8x128xf32>
    %103 = arith.addf %102, %101 : vector<8x128xf32>
    %104 = arith.divf %102, %103 : vector<8x128xf32>
    %105 = vector.extract_strided_slice %86 {offsets = [0, 384], sizes = [8, 128], strides = [1, 1]} : vector<8x512xf32> to vector<8x128xf32>
    %106 = math.tanh %105 : vector<8x128xf32>
    %107 = arith.mulf %98, %78 : vector<8x128xf32>
    %108 = arith.mulf %92, %106 : vector<8x128xf32>
    %109 = arith.addf %107, %108 : vector<8x128xf32>
    %110 = math.tanh %109 : vector<8x128xf32>
    %111 = arith.mulf %104, %110 : vector<8x128xf32>
    %c4_i32 = arith.constant 4 : i32
    %c0_27 = arith.constant 0 : index
    %c0_28 = arith.constant 0 : index
    %112 = vector.load %arg2[%c0_27, %c0_28] : memref<128x512xf32, #tpu.memory_space<vmem>>, vector<128x512xf32>
    %cst_29 = arith.constant dense<0.000000e+00> : vector<8x512xf32>
    %113 = tpu.matmul %111, %112, %cst_29 {dimension_numbers = #tpu.dot_dimension_numbers<[1], [0], [0], [1], [0, 0, 1, 1], [], []>} : vector<8x128xf32>, vector<128x512xf32>, vector<8x512xf32> -> vector<8x512xf32>
    %114 = arith.index_cast %c4_i32 : i32 to index
    %c0_30 = arith.constant 0 : index
    %c0_31 = arith.constant 0 : index
    %115 = vector.load %arg1[%114, %c0_30, %c0_31] : memref<8x8x512xf32, #tpu.memory_space<vmem>>, vector<1x8x512xf32>
    %116 = vector.shape_cast %115 : vector<1x8x512xf32> to vector<8x512xf32>
    %117 = arith.addf %113, %116 : vector<8x512xf32>
    %118 = vector.extract_strided_slice %117 {offsets = [0, 0], sizes = [8, 128], strides = [1, 1]} : vector<8x512xf32> to vector<8x128xf32>
    %119 = arith.negf %118 : vector<8x128xf32>
    %120 = math.exp %119 : vector<8x128xf32>
    %cst_32 = arith.constant 1.000000e+00 : f32
    %121 = vector.broadcast %cst_32 : f32 to vector<8x128xf32>
    %122 = arith.addf %121, %120 : vector<8x128xf32>
    %123 = arith.divf %121, %122 : vector<8x128xf32>
    %124 = vector.extract_strided_slice %117 {offsets = [0, 128], sizes = [8, 128], strides = [1, 1]} : vector<8x512xf32> to vector<8x128xf32>
    %125 = arith.negf %124 : vector<8x128xf32>
    %126 = math.exp %125 : vector<8x128xf32>
    %cst_33 = arith.constant 1.000000e+00 : f32
    %127 = vector.broadcast %cst_33 : f32 to vector<8x128xf32>
    %128 = arith.addf %127, %126 : vector<8x128xf32>
    %129 = arith.divf %127, %128 : vector<8x128xf32>
    %130 = vector.extract_strided_slice %117 {offsets = [0, 256], sizes = [8, 128], strides = [1, 1]} : vector<8x512xf32> to vector<8x128xf32>
    %131 = arith.negf %130 : vector<8x128xf32>
    %132 = math.exp %131 : vector<8x128xf32>
    %cst_34 = arith.constant 1.000000e+00 : f32
    %133 = vector.broadcast %cst_34 : f32 to vector<8x128xf32>
    %134 = arith.addf %133, %132 : vector<8x128xf32>
    %135 = arith.divf %133, %134 : vector<8x128xf32>
    %136 = vector.extract_strided_slice %117 {offsets = [0, 384], sizes = [8, 128], strides = [1, 1]} : vector<8x512xf32> to vector<8x128xf32>
    %137 = math.tanh %136 : vector<8x128xf32>
    %138 = arith.mulf %129, %109 : vector<8x128xf32>
    %139 = arith.mulf %123, %137 : vector<8x128xf32>
    %140 = arith.addf %138, %139 : vector<8x128xf32>
    %141 = math.tanh %140 : vector<8x128xf32>
    %142 = arith.mulf %135, %141 : vector<8x128xf32>
    %c5_i32 = arith.constant 5 : i32
    %c0_35 = arith.constant 0 : index
    %c0_36 = arith.constant 0 : index
    %143 = vector.load %arg2[%c0_35, %c0_36] : memref<128x512xf32, #tpu.memory_space<vmem>>, vector<128x512xf32>
    %cst_37 = arith.constant dense<0.000000e+00> : vector<8x512xf32>
    %144 = tpu.matmul %142, %143, %cst_37 {dimension_numbers = #tpu.dot_dimension_numbers<[1], [0], [0], [1], [0, 0, 1, 1], [], []>} : vector<8x128xf32>, vector<128x512xf32>, vector<8x512xf32> -> vector<8x512xf32>
    %145 = arith.index_cast %c5_i32 : i32 to index
    %c0_38 = arith.constant 0 : index
    %c0_39 = arith.constant 0 : index
    %146 = vector.load %arg1[%145, %c0_38, %c0_39] : memref<8x8x512xf32, #tpu.memory_space<vmem>>, vector<1x8x512xf32>
    %147 = vector.shape_cast %146 : vector<1x8x512xf32> to vector<8x512xf32>
    %148 = arith.addf %144, %147 : vector<8x512xf32>
    %149 = vector.extract_strided_slice %148 {offsets = [0, 0], sizes = [8, 128], strides = [1, 1]} : vector<8x512xf32> to vector<8x128xf32>
    %150 = arith.negf %149 : vector<8x128xf32>
    %151 = math.exp %150 : vector<8x128xf32>
    %cst_40 = arith.constant 1.000000e+00 : f32
    %152 = vector.broadcast %cst_40 : f32 to vector<8x128xf32>
    %153 = arith.addf %152, %151 : vector<8x128xf32>
    %154 = arith.divf %152, %153 : vector<8x128xf32>
    %155 = vector.extract_strided_slice %148 {offsets = [0, 128], sizes = [8, 128], strides = [1, 1]} : vector<8x512xf32> to vector<8x128xf32>
    %156 = arith.negf %155 : vector<8x128xf32>
    %157 = math.exp %156 : vector<8x128xf32>
    %cst_41 = arith.constant 1.000000e+00 : f32
    %158 = vector.broadcast %cst_41 : f32 to vector<8x128xf32>
    %159 = arith.addf %158, %157 : vector<8x128xf32>
    %160 = arith.divf %158, %159 : vector<8x128xf32>
    %161 = vector.extract_strided_slice %148 {offsets = [0, 256], sizes = [8, 128], strides = [1, 1]} : vector<8x512xf32> to vector<8x128xf32>
    %162 = arith.negf %161 : vector<8x128xf32>
    %163 = math.exp %162 : vector<8x128xf32>
    %cst_42 = arith.constant 1.000000e+00 : f32
    %164 = vector.broadcast %cst_42 : f32 to vector<8x128xf32>
    %165 = arith.addf %164, %163 : vector<8x128xf32>
    %166 = arith.divf %164, %165 : vector<8x128xf32>
    %167 = vector.extract_strided_slice %148 {offsets = [0, 384], sizes = [8, 128], strides = [1, 1]} : vector<8x512xf32> to vector<8x128xf32>
    %168 = math.tanh %167 : vector<8x128xf32>
    %169 = arith.mulf %160, %140 : vector<8x128xf32>
    %170 = arith.mulf %154, %168 : vector<8x128xf32>
    %171 = arith.addf %169, %170 : vector<8x128xf32>
    %172 = math.tanh %171 : vector<8x128xf32>
    %173 = arith.mulf %166, %172 : vector<8x128xf32>
    %c6_i32 = arith.constant 6 : i32
    %c0_43 = arith.constant 0 : index
    %c0_44 = arith.constant 0 : index
    %174 = vector.load %arg2[%c0_43, %c0_44] : memref<128x512xf32, #tpu.memory_space<vmem>>, vector<128x512xf32>
    %cst_45 = arith.constant dense<0.000000e+00> : vector<8x512xf32>
    %175 = tpu.matmul %173, %174, %cst_45 {dimension_numbers = #tpu.dot_dimension_numbers<[1], [0], [0], [1], [0, 0, 1, 1], [], []>} : vector<8x128xf32>, vector<128x512xf32>, vector<8x512xf32> -> vector<8x512xf32>
    %176 = arith.index_cast %c6_i32 : i32 to index
    %c0_46 = arith.constant 0 : index
    %c0_47 = arith.constant 0 : index
    %177 = vector.load %arg1[%176, %c0_46, %c0_47] : memref<8x8x512xf32, #tpu.memory_space<vmem>>, vector<1x8x512xf32>
    %178 = vector.shape_cast %177 : vector<1x8x512xf32> to vector<8x512xf32>
    %179 = arith.addf %175, %178 : vector<8x512xf32>
    %180 = vector.extract_strided_slice %179 {offsets = [0, 0], sizes = [8, 128], strides = [1, 1]} : vector<8x512xf32> to vector<8x128xf32>
    %181 = arith.negf %180 : vector<8x128xf32>
    %182 = math.exp %181 : vector<8x128xf32>
    %cst_48 = arith.constant 1.000000e+00 : f32
    %183 = vector.broadcast %cst_48 : f32 to vector<8x128xf32>
    %184 = arith.addf %183, %182 : vector<8x128xf32>
    %185 = arith.divf %183, %184 : vector<8x128xf32>
    %186 = vector.extract_strided_slice %179 {offsets = [0, 128], sizes = [8, 128], strides = [1, 1]} : vector<8x512xf32> to vector<8x128xf32>
    %187 = arith.negf %186 : vector<8x128xf32>
    %188 = math.exp %187 : vector<8x128xf32>
    %cst_49 = arith.constant 1.000000e+00 : f32
    %189 = vector.broadcast %cst_49 : f32 to vector<8x128xf32>
    %190 = arith.addf %189, %188 : vector<8x128xf32>
    %191 = arith.divf %189, %190 : vector<8x128xf32>
    %192 = vector.extract_strided_slice %179 {offsets = [0, 256], sizes = [8, 128], strides = [1, 1]} : vector<8x512xf32> to vector<8x128xf32>
    %193 = arith.negf %192 : vector<8x128xf32>
    %194 = math.exp %193 : vector<8x128xf32>
    %cst_50 = arith.constant 1.000000e+00 : f32
    %195 = vector.broadcast %cst_50 : f32 to vector<8x128xf32>
    %196 = arith.addf %195, %194 : vector<8x128xf32>
    %197 = arith.divf %195, %196 : vector<8x128xf32>
    %198 = vector.extract_strided_slice %179 {offsets = [0, 384], sizes = [8, 128], strides = [1, 1]} : vector<8x512xf32> to vector<8x128xf32>
    %199 = math.tanh %198 : vector<8x128xf32>
    %200 = arith.mulf %191, %171 : vector<8x128xf32>
    %201 = arith.mulf %185, %199 : vector<8x128xf32>
    %202 = arith.addf %200, %201 : vector<8x128xf32>
    %203 = math.tanh %202 : vector<8x128xf32>
    %204 = arith.mulf %197, %203 : vector<8x128xf32>
    %c7_i32 = arith.constant 7 : i32
    %c0_51 = arith.constant 0 : index
    %c0_52 = arith.constant 0 : index
    %205 = vector.load %arg2[%c0_51, %c0_52] : memref<128x512xf32, #tpu.memory_space<vmem>>, vector<128x512xf32>
    %cst_53 = arith.constant dense<0.000000e+00> : vector<8x512xf32>
    %206 = tpu.matmul %204, %205, %cst_53 {dimension_numbers = #tpu.dot_dimension_numbers<[1], [0], [0], [1], [0, 0, 1, 1], [], []>} : vector<8x128xf32>, vector<128x512xf32>, vector<8x512xf32> -> vector<8x512xf32>
    %207 = arith.index_cast %c7_i32 : i32 to index
    %c0_54 = arith.constant 0 : index
    %c0_55 = arith.constant 0 : index
    %208 = vector.load %arg1[%207, %c0_54, %c0_55] : memref<8x8x512xf32, #tpu.memory_space<vmem>>, vector<1x8x512xf32>
    %209 = vector.shape_cast %208 : vector<1x8x512xf32> to vector<8x512xf32>
    %210 = arith.addf %206, %209 : vector<8x512xf32>
    %211 = vector.extract_strided_slice %210 {offsets = [0, 0], sizes = [8, 128], strides = [1, 1]} : vector<8x512xf32> to vector<8x128xf32>
    %212 = arith.negf %211 : vector<8x128xf32>
    %213 = math.exp %212 : vector<8x128xf32>
    %cst_56 = arith.constant 1.000000e+00 : f32
    %214 = vector.broadcast %cst_56 : f32 to vector<8x128xf32>
    %215 = arith.addf %214, %213 : vector<8x128xf32>
    %216 = arith.divf %214, %215 : vector<8x128xf32>
    %217 = vector.extract_strided_slice %210 {offsets = [0, 128], sizes = [8, 128], strides = [1, 1]} : vector<8x512xf32> to vector<8x128xf32>
    %218 = arith.negf %217 : vector<8x128xf32>
    %219 = math.exp %218 : vector<8x128xf32>
    %cst_57 = arith.constant 1.000000e+00 : f32
    %220 = vector.broadcast %cst_57 : f32 to vector<8x128xf32>
    %221 = arith.addf %220, %219 : vector<8x128xf32>
    %222 = arith.divf %220, %221 : vector<8x128xf32>
    %223 = vector.extract_strided_slice %210 {offsets = [0, 256], sizes = [8, 128], strides = [1, 1]} : vector<8x512xf32> to vector<8x128xf32>
    %224 = arith.negf %223 : vector<8x128xf32>
    %225 = math.exp %224 : vector<8x128xf32>
    %cst_58 = arith.constant 1.000000e+00 : f32
    %226 = vector.broadcast %cst_58 : f32 to vector<8x128xf32>
    %227 = arith.addf %226, %225 : vector<8x128xf32>
    %228 = arith.divf %226, %227 : vector<8x128xf32>
    %229 = vector.extract_strided_slice %210 {offsets = [0, 384], sizes = [8, 128], strides = [1, 1]} : vector<8x512xf32> to vector<8x128xf32>
    %230 = math.tanh %229 : vector<8x128xf32>
    %231 = arith.mulf %222, %202 : vector<8x128xf32>
    %232 = arith.mulf %216, %230 : vector<8x128xf32>
    %233 = arith.addf %231, %232 : vector<8x128xf32>
    %234 = math.tanh %233 : vector<8x128xf32>
    %235 = arith.mulf %228, %234 : vector<8x128xf32>
    %c7_i32_59 = arith.constant 7 : i32
    %c0_60 = arith.constant 0 : index
    %c0_61 = arith.constant 0 : index
    %236 = vector.load %arg3[%c0_60, %c0_61] : memref<8x128xf32, #tpu.memory_space<vmem>>, vector<8x128xf32>
    tpu.vector_store %arg3[%c0_60, %c0_61], %235 {strides = array<i32>} : memref<8x128xf32, #tpu.memory_space<vmem>>, vector<8x128xf32>,
    return
  }
  func.func @transform_0(%arg0: i32) -> (i32, i32, i32) {
    %c0_i32 = arith.constant 0 : i32
    %c0_i32_0 = arith.constant 0 : i32
    %c0_i32_1 = arith.constant 0 : i32
    %c0_i32_2 = arith.constant 0 : i32
    return %c0_i32, %c0_i32_0, %c0_i32_1 : i32, i32, i32
  }
  func.func @transform_1(%arg0: i32) -> (i32, i32) {
    %c0_i32 = arith.constant 0 : i32
    %c0_i32_0 = arith.constant 0 : i32
    %c0_i32_1 = arith.constant 0 : i32
    return %c0_i32, %c0_i32_0 : i32, i32
  }
  func.func @transform_2(%arg0: i32) -> (i32, i32) {
    %c0_i32 = arith.constant 0 : i32
    %c0_i32_0 = arith.constant 0 : i32
    %c0_i32_1 = arith.constant 0 : i32
    return %c0_i32, %c0_i32_0 : i32, i32
  }
}

</mosaic_0001>

<bundles_post_ra>
// kernel: tpu_custom_call.1
= control target key start
LH: loop header
LB: loop body
LE: loop exit
PB: predicated region body
PF: predicated region fallthrough
CT: control target
= control target key end

     0   :  { %7 = vsyncpa [#allocation3], 0  ;;  %s2289_s0 = inlined_call_operand.hbm [shape: f32[8,8,512], index: 0, kind: input, shape index: {}]   ;;  %s2290_s1 = inlined_call_operand.hbm [shape: f32[128,512], index: 1, kind: input, shape index: {}]   ;;  %s2291_s2 = inlined_call_operand.hbm [shape: f32[8,128], index: 2, kind: output, shape index: {}]  }
   0x1   :  { %8 = vsyncpa [#allocation6], 0 }
   0x2   :  { %9 = vsyncpa [#allocation4], 0  ;;  %s14_s11 = sshll.u32 %s2289_s0, 4  ;;  %s1502_s12 = smov [#allocation2]   ;;  %s15_s11 = int_to_ptr.hbm [resolvable:$true] %s14_s11 }
   0x3   :  { %s16_s13 = sshll.u32 %s1502_s12, 4  ;;  %s27_s16 = sshll.u32 %s2290_s1, 4  ;;  %s17_s13 = int_to_ptr.vmem [resolvable:$true] %s16_s13  ;;  %s28_s16 = int_to_ptr.hbm [resolvable:$true] %s27_s16 }
   0x4   :  { %s1503_s17 = smov 512   ;;  %s1504_s18 = smov 32  }
   0x5   :  { %22 = dma.hbm_to_vmem [thread:$0]  %s15_s11, 4096, %s17_s13, [#allocation3], %s1503_s17, %s1503_s17, %s1504_s18  }
   0x6   :  { %s1505_s19 = smov [#allocation5]  }
   0x7   :  { %s29_s20 = sshll.u32 %s1505_s19, 4  ;;  %s30_s20 = int_to_ptr.vmem [resolvable:$true] %s29_s20 }
   0x8   :  { %35 = dma.hbm_to_vmem [thread:$0]  %s28_s16, 8192, %s30_s20, [#allocation6], %s1503_s17, %s1503_s17, %s1504_s18  }
   0x9   :  { %1496 = dma.done.wait [#allocation3], 4096  }
   0xa   :  { %1497 = vsyncadd [#allocation3], 4294963200 }
   0xb   :  { %1498 = dma.done.wait [#allocation6], 8192  }
   0xc   :  { %1499 = vsyncadd [#allocation6], 4294959104  ;;  %v1528_v0 = vld [vmem:[#allocation5 + $0x1e0] sm:$0xff]  ;;  %v1530_v1 = vld [vmem:[#allocation5 + $0x1e8] sm:$0xff]  ;;  %s1506_s0 = smov [#allocation7]   ;;  %s1197_s23 = sshll.u32 %s2291_s2, 4  ;;  %s1198_s23 = int_to_ptr.hbm [resolvable:$true] %s1197_s23 }
   0xd   :  { %2393 = vst [vmem:[#allocation11_spill] sm:$0xff] %v1528_v0  ;;  %v1532_v2 = vld [vmem:[#allocation5 + $0x1f0] sm:$0xff]  ;;  %158 = vmatpush.msra.mxu0 %v1528_v0  ;;  %178 = vmatpush.msra.mxu1 %v1530_v1  ;;  %v1536_v3 = vld [vmem:[#allocation5 + $0x1c0] sm:$0xff]  ;;  %v1538_v4 = vld [vmem:[#allocation5 + $0x1c8] sm:$0xff]  ;;  %s1195_s1 = sshll.u32 %s1506_s0, 4  ;;  %s1196_s1 = int_to_ptr.vmem [resolvable:$true] %s1195_s1 }
   0xe   :  { %2394 = vst [vmem:[#allocation12_spill] sm:$0xff] %v1530_v1  ;;  %v1540_v5 = vld [vmem:[#allocation5 + $0x1d0] sm:$0xff]  ;;  %198 = vmatpush.msra.mxu2 %v1532_v2  ;;  %v1543_v6 = vld [vmem:[#allocation5 + $0x1a0] sm:$0xff]  ;;  %v1545_v7 = vld [vmem:[#allocation5 + $0x1a8] sm:$0xff] }
   0xf   :  { %2395 = vst [vmem:[#allocation13_spill] sm:$0xff] %v1532_v2  ;;  %159 = vmatpush.msra.mxu0 %v1536_v3  ;;  %179 = vmatpush.msra.mxu1 %v1538_v4  ;;  %v1549_v8 = vld [vmem:[#allocation5 + $0x1b0] sm:$0xff]  ;;  %v1552_v9 = vld [vmem:[#allocation5 + $0x180] sm:$0xff]  ;;  %v1554_v10 = vld [vmem:[#allocation5 + $0x188] sm:$0xff] }
  0x10   :  { %2396 = vst [vmem:[#allocation14_spill] sm:$0xff] %v1536_v3  ;;  %199 = vmatpush.msra.mxu2 %v1540_v5  ;;  %v1558_v11 = vld [vmem:[#allocation5 + $0x190] sm:$0xff]  ;;  %v1561_v12 = vld [vmem:[#allocation5 + $0x160] sm:$0xff]  ;;  %v1563_v13 = vld [vmem:[#allocation5 + $0x168] sm:$0xff] }
  0x11   :  { %2397 = vst [vmem:[#allocation15_spill] sm:$0xff] %v1538_v4  ;;  %160 = vmatpush.msra.mxu0 %v1543_v6  ;;  %180 = vmatpush.msra.mxu1 %v1545_v7  ;;  %v1567_v14 = vld [vmem:[#allocation5 + $0x170] sm:$0xff]  ;;  %v1570_v15 = vld [vmem:[#allocation5 + $0x140] sm:$0xff]  ;;  %v1572_v16 = vld [vmem:[#allocation5 + $0x148] sm:$0xff] }
  0x12   :  { %2398 = vst [vmem:[#allocation16_spill] sm:$0xff] %v1540_v5  ;;  %200 = vmatpush.msra.mxu2 %v1549_v8  ;;  %v1574_v17 = vld [vmem:[#allocation5 + $0x1f8] sm:$0xff]  ;;  %v1578_v18 = vld [vmem:[#allocation5 + $0x150] sm:$0xff]  ;;  %v1583_v20 = vld [vmem:[#allocation5 + $0x120] sm:$0xff] }
  0x13   :  { %2399 = vst [vmem:[#allocation17_spill] sm:$0xff] %v1545_v7  ;;  %161 = vmatpush.msra.mxu0 %v1552_v9  ;;  %181 = vmatpush.msra.mxu1 %v1554_v10  ;;  %v1580_v19 = vld [vmem:[#allocation5 + $0x1d8] sm:$0xff]  ;;  %v1585_v21 = vld [vmem:[#allocation5 + $0x128] sm:$0xff]  ;;  %v1590_v22 = vld [vmem:[#allocation5 + $0x130] sm:$0xff] }
  0x14   :  { %2400 = vst [vmem:[#allocation18_spill] sm:$0xff] %v1549_v8  ;;  %201 = vmatpush.msra.mxu2 %v1558_v11  ;;  %218 = vmatpush.msra.mxu3 %v1574_v17  ;;  %v1592_v23 = vld [vmem:[#allocation5 + $0x1b8] sm:$0xff]  ;;  %v1595_v24 = vld [vmem:[#allocation5 + $0x100] sm:$0xff]  ;;  %v1597_v25 = vld [vmem:[#allocation5 + $0x108] sm:$0xff] }
  0x15   :  { %2401 = vst [vmem:[#allocation19_spill] sm:$0xff] %v1552_v9  ;;  %162 = vmatpush.msra.mxu0 %v1561_v12  ;;  %182 = vmatpush.msra.mxu1 %v1563_v13  ;;  %v1602_v26 = vld [vmem:[#allocation5 + $0x110] sm:$0xff]  ;;  %v1604_v27 = vld [vmem:[#allocation5 + $0x198] sm:$0xff]  ;;  %v1607_v28 = vld [vmem:[#allocation5 + $0xe0] sm:$0xff] }
  0x16   :  { %2402 = vst [vmem:[#allocation20_spill] sm:$0xff] %v1570_v15  ;;  %202 = vmatpush.msra.mxu2 %v1567_v14  ;;  %219 = vmatpush.msra.mxu3 %v1580_v19  ;;  %v1609_v29 = vld [vmem:[#allocation5 + $0xe8] sm:$0xff]  ;;  %v1614_v30 = vld [vmem:[#allocation5 + $0xf0] sm:$0xff]  ;;  %v1616_v31 = vld [vmem:[#allocation5 + $0x178] sm:$0xff] }
  0x17   :  { %2403 = vst [vmem:[#allocation21_spill] sm:$0xff] %v1578_v18  ;;  %163 = vmatpush.msra.mxu0 %v1570_v15  ;;  %183 = vmatpush.msra.mxu1 %v1572_v16  ;;  %v1619_v32 = vld [vmem:[#allocation5 + $0xc0] sm:$0xff]  ;;  %v1621_v33 = vld [vmem:[#allocation5 + $0xc8] sm:$0xff]  ;;  %v1626_v34 = vld [vmem:[#allocation5 + $0xd0] sm:$0xff] }
  0x18   :  { %203 = vmatpush.msra.mxu2 %v1578_v18  ;;  %220 = vmatpush.msra.mxu3 %v1592_v23  ;;  %v1628_v35 = vld [vmem:[#allocation5 + $0x158] sm:$0xff]  ;;  %v1631_v36 = vld [vmem:[#allocation5 + $0xa0] sm:$0xff]  ;;  %v1633_v37 = vld [vmem:[#allocation5 + $0xa8] sm:$0xff] }
  0x19   :  { %164 = vmatpush.msra.mxu0 %v1583_v20  ;;  %184 = vmatpush.msra.mxu1 %v1585_v21  ;;  %2404 = vst [vmem:[#allocation22_spill] sm:$0xff] %v1631_v36  ;;  %v44_v38 = vld [vmem:[#allocation2] sm:$0xff]  ;;  %v1638_v39 = vld [vmem:[#allocation5 + $0xb0] sm:$0xff]  ;;  %v1640_v40 = vld [vmem:[#allocation5 + $0x138] sm:$0xff] }
  0x1a   :  { %204 = vmatpush.msra.mxu2 %v1590_v22  ;;  %221 = vmatpush.msra.mxu3 %v1604_v27  ;;  %2405 = vst [vmem:[#allocation23_spill] sm:$0xff] %v1633_v37  ;;  %v45_v41 = vld [vmem:[#allocation2 + $0x10] sm:$0xff]  ;;  %v1208_v42 = vmul.f32 -1.442695, %v44_v38  ;;  %v1643_v43 = vld [vmem:[#allocation5 + $0x80] sm:$0xff]  ;;  %v1645_v44 = vld [vmem:[#allocation5 + $0x88] sm:$0xff] }
  0x1b   :  { %165 = vmatpush.msra.mxu0 %v1595_v24  ;;  %185 = vmatpush.msra.mxu1 %v1597_v25  ;;  %2406 = vst [vmem:[#allocation24_spill] sm:$0xff] %v1638_v39  ;;  %v1209_v45 = vmul.f32 -1.442695, %v45_v41  ;;  %v1650_v46 = vld [vmem:[#allocation5 + $0x90] sm:$0xff]  ;;  %v1652_v47 = vld [vmem:[#allocation5 + $0x118] sm:$0xff]  ;;  %v1655_v48 = vld [vmem:[#allocation5 + $0x60] sm:$0xff] }
  0x1c   :  { %205 = vmatpush.msra.mxu2 %v1602_v26  ;;  %222 = vmatpush.msra.mxu3 %v1616_v31  ;;  %2407 = vst [vmem:[#allocation25_spill] sm:$0xff] %v1643_v43  ;;  %1236 = vpow2.f32 %v1208_v42  ;;  %v1657_v49 = vld [vmem:[#allocation5 + $0x68] sm:$0xff]  ;;  %v1662_v50 = vld [vmem:[#allocation5 + $0x70] sm:$0xff]  ;;  %v1665_v51 = vld [vmem:[#allocation5 + $0x40] sm:$0xff] }
  0x1d   :  { %166 = vmatpush.msra.mxu0 %v1607_v28  ;;  %186 = vmatpush.msra.mxu1 %v1609_v29  ;;  %2408 = vst [vmem:[#allocation26_spill] sm:$0xff] %v1645_v44  ;;  %1238 = vpow2.f32 %v1209_v45  ;;  %v1667_v52 = vld [vmem:[#allocation5 + $0x48] sm:$0xff]  ;;  %v1672_v53 = vld [vmem:[#allocation5 + $0x50] sm:$0xff]  ;;  %v1675_v54 = vld [vmem:[#allocation5 + $0x20] sm:$0xff] }
  0x1e   :  { %206 = vmatpush.msra.mxu2 %v1614_v30  ;;  %223 = vmatpush.msra.mxu3 %v1628_v35  ;;  %2409 = vst [vmem:[#allocation27_spill] sm:$0xff] %v1650_v46  ;;  %v1677_v55 = vld [vmem:[#allocation5 + $0x28] sm:$0xff]  ;;  %v1679_v56 = vld [vmem:[#allocation5 + $0xf8] sm:$0xff]  ;;  %v1683_v58 = vld [vmem:[#allocation5 + $0x30] sm:$0xff] }
  0x1f   :  { %167 = vmatpush.msra.mxu0 %v1619_v32  ;;  %187 = vmatpush.msra.mxu1 %v1621_v33  ;;  %2410 = vst [vmem:[#allocation28_spill] sm:$0xff] %v1655_v48  ;;  %v1685_v59 = vld [vmem:[#allocation5 + $0xd8] sm:$0xff]  ;;  %v1688_v61 = vld [vmem:[#allocation5] sm:$0xff]  ;;  %v1690_v62 = vld [vmem:[#allocation5 + $0x8] sm:$0xff] }
  0x20   :  { %207 = vmatpush.msra.mxu2 %v1626_v34  ;;  %2411 = vst [vmem:[#allocation29_spill] sm:$0xff] %v1657_v49  ;;  %224 = vmatpush.msra.mxu3 %v1640_v40  ;;  %v1695_v38 = vld [vmem:[#allocation5 + $0x10] sm:$0xff]  ;;  %v1699_v42 = vld [vmem:[#allocation5 + $0xb8] sm:$0xff] }
  0x21   :  { %168 = vmatpush.msra.mxu0 %v1631_v36  ;;  %188 = vmatpush.msra.mxu1 %v1633_v37  ;;  %2412 = vst [vmem:[#allocation30_spill] sm:$0xff] %v1662_v50  ;;  %v1706_v45 = vld [vmem:[#allocation5 + $0x98] sm:$0xff] }
  0x22   :  { %208 = vmatpush.msra.mxu2 %v1638_v39  ;;  %2413 = vst [vmem:[#allocation31_spill] sm:$0xff] %v1665_v51  ;;  %225 = vmatpush.msra.mxu3 %v1652_v47  ;;  %v1237_v57 = vpop.eup %1236 }
  0x23   :  { %169 = vmatpush.msra.mxu0 %v1643_v43  ;;  %189 = vmatpush.msra.mxu1 %v1645_v44  ;;  %2414 = vst [vmem:[#allocation32_spill] sm:$0xff] %v1667_v52  ;;  %v1239_v60 = vpop.eup %1238  ;;  %v50_v63 = vadd.f32 1.0, %v1237_v57  ;;  %v1710_v57 = vld [vmem:[#allocation5 + $0x78] sm:$0xff] }
  0x24   :  { %209 = vmatpush.msra.mxu2 %v1650_v46  ;;  %2415 = vst [vmem:[#allocation33_spill] sm:$0xff] %v1672_v53  ;;  %226 = vmatpush.msra.mxu3 %v1679_v56  ;;  %v1697_v41 = vadd.f32 1.0, %v1239_v60  ;;  %v46_v60 = vld [vmem:[#allocation2 + $0x18] sm:$0xff] }
  0x25   :  { %170 = vmatpush.msra.mxu0 %v1655_v48  ;;  %190 = vmatpush.msra.mxu1 %v1657_v49  ;;  %2416 = vst [vmem:[#allocation34_spill] sm:$0xff] %v1675_v54  ;;  %1240 = vrcp.f32 %v50_v63  ;;  %vm56_vm0 = vweird.f32 %v50_v63 }
  0x26   :  { %210 = vmatpush.msra.mxu2 %v1662_v50  ;;  %2417 = vst [vmem:[#allocation35_spill] sm:$0xff] %v1677_v55  ;;  %227 = vmatpush.msra.mxu3 %v1685_v59  ;;  %1242 = vrcp.f32 %v1697_v41  ;;  %vm75_vm4 = vweird.f32 %v1697_v41 }
  0x27   :  { %171 = vmatpush.msra.mxu0 %v1665_v51  ;;  %191 = vmatpush.msra.mxu1 %v1667_v52  ;;  %2418 = vst [vmem:[#allocation36_spill] sm:$0xff] %v1683_v58  ;;  %1244 = vtanh.f32 %v46_v60 }
  0x28   :  { %2419 = vst [vmem:[#allocation37_spill] sm:$0xff] %v1685_v59  ;;  %211 = vmatpush.msra.mxu2 %v1672_v53  ;;  %228 = vmatpush.msra.mxu3 %v1699_v42 }
  0x29   :  { %2420 = vst [vmem:[#allocation38_spill] sm:$0xff] %v1688_v61  ;;  %172 = vmatpush.msra.mxu0 %v1675_v54  ;;  %192 = vmatpush.msra.mxu1 %v1677_v55 }
  0x2a   :  { %2421 = vst [vmem:[#allocation39_spill] sm:$0xff] %v1690_v62  ;;  %212 = vmatpush.msra.mxu2 %v1683_v58  ;;  %229 = vmatpush.msra.mxu3 %v1706_v45 }
  0x2b   :  { %2422 = vst [vmem:[#allocation40_spill] sm:$0xff] %v1695_v38  ;;  %173 = vmatpush.msra.mxu0 %v1688_v61  ;;  %193 = vmatpush.msra.mxu1 %v1690_v62  ;;  %v1716_v62 = vld [vmem:[#allocation5 + $0x58] sm:$0xff] }
  0x2c   :  { %2423 = vst [vmem:[#allocation41_spill] sm:$0xff] %v1699_v42  ;;  %213 = vmatpush.msra.mxu2 %v1695_v38  ;;  %v1241_v38 = vpop.eup %1240  ;;  %230 = vmatpush.msra.mxu3 %v1710_v57 }
  0x2d   :  { %2424 = vst [vmem:[#allocation42_spill] sm:$0xff] %v1706_v45  ;;  %306 = vmatpush.msrb.mxu0 %v1528_v0  ;;  %326 = vmatpush.msrb.mxu1 %v1530_v1  ;;  %v1722_v61 = vpop.eup %1242  ;;  %v52_v0 = vmul.f32 %v1241_v38, %v50_v63  ;;  %v1724_v1 = vld [vmem:[#allocation5 + $0x38] sm:$0xff]  ;;  %vm57_vm1 = vweird.f32 %v1241_v38 }
  0x2e   :  { %2425 = vst [vmem:[#allocation43_spill] sm:$0xff] %v1710_v57  ;;  %346 = vmatpush.msrb.mxu2 %v1532_v2  ;;  %v62_v2 = vand.u32 2147483648, %v50_v63  ;;  %231 = vmatpush.msra.mxu3 %v1716_v62  ;;  %v1732_v57 = vld [vmem:[#allocation5 + $0x18] sm:$0xff]  ;;  %vm1740_vm2 = vmor %vm56_vm0, %vm57_vm1  ;;  %vm76_vm5 = vweird.f32 %v1722_v61 }
  0x2f   :  { %2426 = vst [vmem:[#allocation44_spill] sm:$0xff] %v1716_v62  ;;  %307 = vmatpush.msrb.mxu0 %v1536_v3  ;;  %327 = vmatpush.msrb.mxu1 %v1538_v4  ;;  %v71_v3 = vmul.f32 %v1722_v61, %v1697_v41  ;;  %v53_v4 = vsub.f32 1.0, %v52_v0  ;;  %vm1762_vm6 = vmor %vm75_vm4, %vm76_vm5 }
  0x30   :  { %347 = vmatpush.msrb.mxu2 %v1540_v5  ;;  %2427 = vst [vmem:[#allocation45_spill] sm:$0xff] %v1724_v1  ;;  %v60_v5 = vand.u32 2147483647, %v50_v63  ;;  %232 = vmatpush.msra.mxu3 %v1724_v1  ;;  %v63_v63 = vor.u32 1.1754944e-38, %v62_v2 }
  0x31   :  { %308 = vmatpush.msrb.mxu0 %v1543_v6  ;;  %328 = vmatpush.msrb.mxu1 %v1545_v7  ;;  %2428 = vst [vmem:[#allocation46_spill] sm:$0xff] %v1732_v57  ;;  %v72_v7 = vsub.f32 1.0, %v71_v3  ;;  %v54_v60 = vmul.f32 %v1241_v38, %v53_v4  ;;  %v1245_v4 = vpop.eup %1244 }
  0x32   :  { %348 = vmatpush.msrb.mxu2 %v1549_v8  ;;  %233 = vmatpush.msra.mxu3 %v1732_v57  ;;  %vm61_vm3 = vcmp.eq.f32.partialorder %v60_v5, 8.507059e+37 }
  0x33   :  { %309 = vmatpush.msrb.mxu0 %v1552_v9  ;;  %329 = vmatpush.msrb.mxu1 %v1554_v10  ;;  %v73_v8 = vmul.f32 %v1722_v61, %v72_v7  ;;  %v55_v3 = vadd.f32 %v1241_v38, %v54_v60  ;;  %v81_v7 = vand.u32 2147483648, %v1697_v41 }
  0x34   :  { %349 = vmatpush.msrb.mxu2 %v1558_v11  ;;  %366 = vmatpush.msrb.mxu3 %v1574_v17 }
  0x35   :  { %310 = vmatpush.msrb.mxu0 %v1561_v12  ;;  %330 = vmatpush.msrb.mxu1 %v1563_v13  ;;  %v59_v2 = vsel %vm1740_vm2, %v1241_v38, %v55_v3  ;;  %v74_v60 = vadd.f32 %v1722_v61, %v73_v8  ;;  %v82_v8 = vor.u32 1.1754944e-38, %v81_v7  ;;  %v2435_v3 = vld [vmem:[#allocation40_spill] sm:$0xff] }
  0x36   :  { %350 = vmatpush.msrb.mxu2 %v1567_v14  ;;  %367 = vmatpush.msrb.mxu3 %v1580_v19  ;;  %v64_v5 = vsel %vm61_vm3, %v63_v63, %v59_v2  ;;  %v2434_v63 = vld [vmem:[#allocation39_spill] sm:$0xff]  ;;  %v2438_v7 = vld [vmem:[#allocation12_spill] sm:$0xff] }
  0x37   :  { %311 = vmatpush.msrb.mxu0 %v1570_v15  ;;  %331 = vmatpush.msrb.mxu1 %v1572_v16  ;;  %v79_v15 = vand.u32 2147483647, %v1697_v41  ;;  %v1766_v38 = vmul.f32 %v1245_v4, %v64_v5  ;;  %v78_v41 = vsel %vm1762_vm6, %v1722_v61, %v74_v60  ;;  %v2433_v61 = vld [vmem:[#allocation38_spill] sm:$0xff]  ;;  %v2436_v4 = vld [vmem:[#allocation11_spill] sm:$0xff]  ;;  %v2439_v5 = vld [vmem:[#allocation13_spill] sm:$0xff] }
  0x38   :  { %351 = vmatpush.msrb.mxu2 %v1578_v18  ;;  %368 = vmatpush.msrb.mxu3 %v1592_v23  ;;  %v2437_v2 = vld [vmem:[#allocation43_spill] sm:$0xff]  ;;  %v2440_v60 = vld [vmem:[#allocation14_spill] sm:$0xff] }
  0x39   :  { %312 = vmatpush.msrb.mxu0 %v1583_v20  ;;  %332 = vmatpush.msrb.mxu1 %v1585_v21  ;;  %1246 = vtanh.f32 %v1766_v38  ;;  %vm80_vm7 = vcmp.eq.f32.partialorder %v79_v15, 8.507059e+37 }
  0x3a   :  { %352 = vmatpush.msrb.mxu2 %v1590_v22  ;;  %369 = vmatpush.msrb.mxu3 %v1604_v27  ;;  %v83_v0 = vsel %vm80_vm7, %v82_v8, %v78_v41  ;;  %v2441_v8 = vld [vmem:[#allocation15_spill] sm:$0xff]  ;;  %v2442_v41 = vld [vmem:[#allocation16_spill] sm:$0xff] }
  0x3b   :  { %313 = vmatpush.msrb.mxu0 %v1595_v24  ;;  %333 = vmatpush.msrb.mxu1 %v1597_v25 }
  0x3c   :  { %353 = vmatpush.msrb.mxu2 %v1602_v26  ;;  %370 = vmatpush.msrb.mxu3 %v1616_v31 }
  0x3d   :  { %314 = vmatpush.msrb.mxu0 %v1607_v28  ;;  %334 = vmatpush.msrb.mxu1 %v1609_v29 }
  0x3e   :  { %354 = vmatpush.msrb.mxu2 %v1614_v30  ;;  %371 = vmatpush.msrb.mxu3 %v1628_v35 }
  0x3f   :  { %315 = vmatpush.msrb.mxu0 %v1619_v32  ;;  %335 = vmatpush.msrb.mxu1 %v1621_v33  ;;  %v1247_v15 = vpop.eup %1246 }
  0x40   :  { %355 = vmatpush.msrb.mxu2 %v1626_v34  ;;  %372 = vmatpush.msrb.mxu3 %v1640_v40  ;;  %v88_v18 = vmul.f32 %v1247_v15, %v83_v0  ;;  %v2443_v0 = vld [vmem:[#allocation17_spill] sm:$0xff]  ;;  %v2444_v15 = vld [vmem:[#allocation18_spill] sm:$0xff] }
  0x41   :  { %316 = vmatpush.msrb.mxu0 %v1631_v36  ;;  %336 = vmatpush.msrb.mxu1 %v1633_v37 }
  0x42   :  { %356 = vmatpush.msrb.mxu2 %v1638_v39  ;;  %373 = vmatpush.msrb.mxu3 %v1652_v47 }
  0x43   :  { %317 = vmatpush.msrb.mxu0 %v1643_v43  ;;  %337 = vmatpush.msrb.mxu1 %v1645_v44 }
  0x44   :  { %357 = vmatpush.msrb.mxu2 %v1650_v46  ;;  %174 = vmatmul.f32.vlgmr.msra.gmra.mxu0 %v88_v18 }
  0x45   :  { %318 = vmatpush.msrb.mxu0 %v1655_v48  ;;  %194 = vmatmul.f32.vlgmr.msra.gmra.mxu1 %v88_v18 }
  0x46   :  { %214 = vmatmul.f32.vlgmr.msra.gmra.mxu2 %v88_v18  ;;  %234 = vmatmul.f32.vlgmr.msra.gmra.mxu3 %v88_v18  ;;  %v2445_v18 = vld [vmem:[#allocation20_spill] sm:$0xff] }
  0x47   :  { %374 = vmatpush.msrb.mxu3 %v1679_v56  ;;  %338 = vmatpush.msrb.mxu1 %v1657_v49 }
  0x48   :  { %358 = vmatpush.msrb.mxu2 %v1662_v50  ;;  %319 = vmatpush.msrb.mxu0 %v1665_v51 }
  0x49   :  { %375 = vmatpush.msrb.mxu3 %v1685_v59  ;;  %339 = vmatpush.msrb.mxu1 %v1667_v52 }
  0x4a   :  { %359 = vmatpush.msrb.mxu2 %v1672_v53  ;;  %320 = vmatpush.msrb.mxu0 %v1675_v54 }
  0x4b   :  { %376 = vmatpush.msrb.mxu3 %v1699_v42  ;;  %340 = vmatpush.msrb.mxu1 %v1677_v55 }
  0x4c   :  { %360 = vmatpush.msrb.mxu2 %v1683_v58  ;;  %321 = vmatpush.msrb.mxu0 %v2433_v61 }
  0x4d   :  { %377 = vmatpush.msrb.mxu3 %v1706_v45  ;;  %341 = vmatpush.msrb.mxu1 %v2434_v63 }
  0x4e   :  { %361 = vmatpush.msrb.mxu2 %v2435_v3  ;;  %454 = vmatpush.msra.mxu0 %v2436_v4 }
  0x4f   :  { %378 = vmatpush.msrb.mxu3 %v2437_v2  ;;  %474 = vmatpush.msra.mxu1 %v2438_v7 }
  0x50   :  { %494 = vmatpush.msra.mxu2 %v2439_v5  ;;  %455 = vmatpush.msra.mxu0 %v2440_v60 }
  0x51   :  { %379 = vmatpush.msrb.mxu3 %v1716_v62  ;;  %475 = vmatpush.msra.mxu1 %v2441_v8 }
  0x52   :  { %495 = vmatpush.msra.mxu2 %v2442_v41  ;;  %456 = vmatpush.msra.mxu0 %v1543_v6 }
  0x53   :  { %380 = vmatpush.msrb.mxu3 %v1724_v1  ;;  %476 = vmatpush.msra.mxu1 %v2443_v0 }
  0x54   :  { %496 = vmatpush.msra.mxu2 %v2444_v15  ;;  %457 = vmatpush.msra.mxu0 %v1552_v9  ;;  %v2446_v9 = vld [vmem:[#allocation21_spill] sm:$0xff] }
  0x55   :  { %381 = vmatpush.msrb.mxu3 %v1732_v57  ;;  %477 = vmatpush.msra.mxu1 %v1554_v10 }
  0x56   :  { %497 = vmatpush.msra.mxu2 %v1558_v11  ;;  %458 = vmatpush.msra.mxu0 %v1561_v12 }
  0x57   :  { %514 = vmatpush.msra.mxu3 %v1574_v17  ;;  %478 = vmatpush.msra.mxu1 %v1563_v13 }
  0x58   :  { %498 = vmatpush.msra.mxu2 %v1567_v14  ;;  %459 = vmatpush.msra.mxu0 %v2445_v18 }
  0x59   :  { %515 = vmatpush.msra.mxu3 %v1580_v19  ;;  %479 = vmatpush.msra.mxu1 %v1572_v16 }
  0x5a   :  { %499 = vmatpush.msra.mxu2 %v2446_v9  ;;  %460 = vmatpush.msra.mxu0 %v1583_v20 }
  0x5b   :  { %516 = vmatpush.msra.mxu3 %v1592_v23  ;;  %480 = vmatpush.msra.mxu1 %v1585_v21 }
  0x5c   :  { %500 = vmatpush.msra.mxu2 %v1590_v22  ;;  %461 = vmatpush.msra.mxu0 %v1595_v24 }
  0x5d   :  { %517 = vmatpush.msra.mxu3 %v1604_v27  ;;  %481 = vmatpush.msra.mxu1 %v1597_v25 }
  0x5e   :  { %501 = vmatpush.msra.mxu2 %v1602_v26  ;;  %462 = vmatpush.msra.mxu0 %v1607_v28 }
  0x5f   :  { %518 = vmatpush.msra.mxu3 %v1616_v31  ;;  %482 = vmatpush.msra.mxu1 %v1609_v29 }
  0x60   :  { %502 = vmatpush.msra.mxu2 %v1614_v30  ;;  %463 = vmatpush.msra.mxu0 %v1619_v32 }
  0x61   :  { %519 = vmatpush.msra.mxu3 %v1628_v35  ;;  %483 = vmatpush.msra.mxu1 %v1621_v33 }
  0x62   :  { %503 = vmatpush.msra.mxu2 %v1626_v34  ;;  %464 = vmatpush.msra.mxu0 %v1631_v36 }
  0x63   :  { %520 = vmatpush.msra.mxu3 %v1640_v40  ;;  %484 = vmatpush.msra.mxu1 %v1633_v37 }
  0x64   :  { %504 = vmatpush.msra.mxu2 %v1638_v39  ;;  %465 = vmatpush.msra.mxu0 %v1643_v43 }
  0x65   :  { %521 = vmatpush.msra.mxu3 %v1652_v47  ;;  %485 = vmatpush.msra.mxu1 %v1645_v44 }
  0x66   :  { %505 = vmatpush.msra.mxu2 %v1650_v46  ;;  %466 = vmatpush.msra.mxu0 %v1655_v48 }
  0x67   :  { %522 = vmatpush.msra.mxu3 %v1679_v56  ;;  %486 = vmatpush.msra.mxu1 %v1657_v49 }
  0x68   :  { %506 = vmatpush.msra.mxu2 %v1662_v50  ;;  %467 = vmatpush.msra.mxu0 %v1665_v51 }
  0x69   :  { %523 = vmatpush.msra.mxu3 %v1685_v59  ;;  %487 = vmatpush.msra.mxu1 %v1667_v52 }
  0x6a   :  { %507 = vmatpush.msra.mxu2 %v1672_v53  ;;  %468 = vmatpush.msra.mxu0 %v1675_v54  ;;  %v154_v54 = vld [vmem:[#allocation2 + $0x20] sm:$0xff] }
  0x6b   :  { %524 = vmatpush.msra.mxu3 %v1699_v42  ;;  %488 = vmatpush.msra.mxu1 %v1677_v55  ;;  %v155_v55 = vld [vmem:[#allocation2 + $0x28] sm:$0xff] }
  0x6c   :  { %508 = vmatpush.msra.mxu2 %v1683_v58  ;;  %469 = vmatpush.msra.mxu0 %v2433_v61 }
  0x6d   :  { %525 = vmatpush.msra.mxu3 %v1706_v45  ;;  %489 = vmatpush.msra.mxu1 %v2434_v63  ;;  %v156_v63 = vld [vmem:[#allocation2 + $0x30] sm:$0xff] }
  0x6e   :  { %509 = vmatpush.msra.mxu2 %v2435_v3 }
  0x6f   :  { %526 = vmatpush.msra.mxu3 %v2437_v2 }
  0x71   :  { %527 = vmatpush.msra.mxu3 %v1716_v62 }
  0x73   :  { %528 = vmatpush.msra.mxu3 %v1724_v1 }
  0x75   :  { %529 = vmatpush.msra.mxu3 %v1732_v57  ;;  %v157_v57 = vld [vmem:[#allocation2 + $0x38] sm:$0xff] }
  0xc1   :  { %v175_v53 = vpop.f32.mrf.mxu0 }
  0xc2   :  { %v195_v52 = vpop.f32.mrf.mxu1  ;;  %v176_v51 = vadd.f32 %v175_v53, %v154_v54 }
  0xc3   :  { %v196_v58 = vadd.f32 %v195_v52, %v155_v55 }
  0xc4   :  { %v1210_v50 = vmul.f32 -1.442695, %v176_v51 }
  0xc5   :  { %v1211_v61 = vmul.f32 -1.442695, %v196_v58 }
  0xc6   :  { %1248 = vpow2.f32 %v1210_v50 }
  0xc7   :  { %1250 = vpow2.f32 %v1211_v61 }
  0xc9   :  { %v215_v2 = vpop.f32.mrf.mxu2  ;;  %v235_v46 = vpop.f32.mrf.mxu3 }
  0xca   :  { %v216_v49 = vadd.f32 %v215_v2, %v156_v63  ;;  %v236_v53 = vadd.f32 %v235_v46, %v157_v57 }
  0xcc   :  { %v1212_v3 = vmul.f32 -1.442695, %v216_v49  ;;  %v1249_v48 = vpop.eup %1248 }
  0xcd   :  { %v1251_v62 = vpop.eup %1250  ;;  %v241_v45 = vadd.f32 1.0, %v1249_v48 }
  0xce   :  { %1252 = vpow2.f32 %v1212_v3  ;;  %v260_v1 = vadd.f32 1.0, %v1251_v62 }
  0xcf   :  { %1254 = vrcp.f32 %v241_v45  ;;  %v253_v61 = vand.u32 2147483648, %v241_v45  ;;  %v251_v62 = vand.u32 2147483647, %v241_v45  ;;  %vm247_vm10 = vweird.f32 %v241_v45 }
  0xd0   :  { %1256 = vrcp.f32 %v260_v1  ;;  %v272_v63 = vand.u32 2147483648, %v260_v1  ;;  %v270_v2 = vand.u32 2147483647, %v260_v1  ;;  %vm266_vm11 = vweird.f32 %v260_v1 }
  0xd1   :  { %v254_v57 = vor.u32 1.1754944e-38, %v253_v61  ;;  %vm252_vm14 = vcmp.eq.f32.partialorder %v251_v62, 8.507059e+37 }
  0xd2   :  { %vm271_vm15 = vcmp.eq.f32.partialorder %v270_v2, 8.507059e+37 }
  0xd4   :  { %v1253_v44 = vpop.eup %1252 }
  0xd5   :  { %v279_v52 = vadd.f32 1.0, %v1253_v44  ;;  %v1255_v51 = vpop.eup %1254 }
  0xd6   :  { %v1257_v54 = vpop.eup %1256  ;;  %v243_v50 = vmul.f32 %v1255_v51, %v241_v45  ;;  %vm248_vm8 = vweird.f32 %v1255_v51 }
  0xd7   :  { %1258 = vrcp.f32 %v279_v52  ;;  %v262_v55 = vmul.f32 %v1257_v54, %v260_v1  ;;  %vm267_vm9 = vweird.f32 %v1257_v54  ;;  %vm249_vm12 = vmor %vm247_vm10, %vm248_vm8  ;;  %v291_v61 = vand.u32 2147483648, %v279_v52 }
  0xd8   :  { %1260 = vtanh.f32 %v236_v53  ;;  %v244_v58 = vsub.f32 1.0, %v243_v50  ;;  %vm268_vm13 = vmor %vm266_vm11, %vm267_vm9  ;;  %v273_v53 = vor.u32 1.1754944e-38, %v272_v63  ;;  %vm285_vm1 = vweird.f32 %v279_v52 }
  0xd9   :  { %v263_v49 = vsub.f32 1.0, %v262_v55  ;;  %v289_v63 = vand.u32 2147483647, %v279_v52 }
  0xda   :  { %v245_v48 = vmul.f32 %v1255_v51, %v244_v58 }
  0xdb   :  { %v264_v3 = vmul.f32 %v1257_v54, %v263_v49  ;;  %vm290_vm3 = vcmp.eq.f32.partialorder %v289_v63, 8.507059e+37 }
  0xdc   :  { %v246_v42 = vadd.f32 %v1255_v51, %v245_v48 }
  0xdd   :  { %v1259_v43 = vpop.eup %1258  ;;  %v265_v39 = vadd.f32 %v1257_v54, %v264_v3 }
  0xde   :  { %v1261_v44 = vpop.eup %1260  ;;  %v281_v46 = vmul.f32 %v1259_v43, %v279_v52  ;;  %v250_v50 = vsel %vm249_vm12, %v1255_v51, %v246_v42  ;;  %vm286_vm0 = vweird.f32 %v1259_v43  ;;  %v292_v51 = vor.u32 1.1754944e-38, %v291_v61 }
  0xdf   :  { %v255_v58 = vsel %vm252_vm14, %v254_v57, %v250_v50  ;;  %v269_v37 = vsel %vm268_vm13, %v1257_v54, %v265_v39  ;;  %vm287_vm2 = vmor %vm285_vm1, %vm286_vm0 }
  0xe0   :  { %v282_v55 = vsub.f32 1.0, %v281_v46  ;;  %v274_v49 = vsel %vm271_vm15, %v273_v53, %v269_v37  ;;  %v297_v36 = vmul.f32 %v1261_v44, %v255_v58  ;;  %v304_v46 = vld [vmem:[#allocation2 + $0x50] sm:$0xff] }
  0xe1   :  { %v296_v59 = vmul.f32 %v274_v49, %v1766_v38  ;;  %v2466_v38 = vld [vmem:[#allocation35_spill] sm:$0xff] }
  0xe2   :  { %v283_v48 = vmul.f32 %v1259_v43, %v282_v55 }
  0xe3   :  { %v1878_v45 = vadd.f32 %v297_v36, %v296_v59  ;;  %v2447_v36 = vld [vmem:[#allocation19_spill] sm:$0xff]  ;;  %v2465_v59 = vld [vmem:[#allocation34_spill] sm:$0xff] }
  0xe4   :  { %v284_v1 = vadd.f32 %v1259_v43, %v283_v48 }
  0xe5   :  { %1262 = vtanh.f32 %v1878_v45 }
  0xe6   :  { %v288_v42 = vsel %vm287_vm2, %v1259_v43, %v284_v1  ;;  %v2464_v43 = vld [vmem:[#allocation44_spill] sm:$0xff]  ;;  %v305_v1 = vld [vmem:[#allocation2 + $0x58] sm:$0xff] }
  0xe7   :  { %v293_v54 = vsel %vm290_vm3, %v292_v51, %v288_v42 }
  0xeb   :  { %v1263_v39 = vpop.eup %1262 }
  0xec   :  { %v300_v37 = vmul.f32 %v1263_v39, %v293_v54 }
  0xee   :  { %322 = vmatmul.f32.vlgmr.msrb.gmra.mxu0 %v300_v37  ;;  %342 = vmatmul.f32.vlgmr.msrb.gmra.mxu1 %v300_v37 }
  0xef   :  { %362 = vmatmul.f32.vlgmr.msrb.gmra.mxu2 %v300_v37  ;;  %382 = vmatmul.f32.vlgmr.msrb.gmra.mxu3 %v300_v37 }
  0xf0   :  { %602 = vmatpush.msrb.mxu0 %v2436_v4  ;;  %622 = vmatpush.msrb.mxu1 %v2438_v7  ;;  %v2467_v4 = vld [vmem:[#allocation36_spill] sm:$0xff]  ;;  %v2468_v7 = vld [vmem:[#allocation45_spill] sm:$0xff] }
  0xf1   :  { %642 = vmatpush.msrb.mxu2 %v2439_v5  ;;  %662 = vmatpush.msrb.mxu3 %v1574_v17  ;;  %v2469_v5 = vld [vmem:[#allocation38_spill] sm:$0xff] }
  0xf2   :  { %603 = vmatpush.msrb.mxu0 %v2440_v60  ;;  %623 = vmatpush.msrb.mxu1 %v2441_v8  ;;  %v2470_v60 = vld [vmem:[#allocation39_spill] sm:$0xff]  ;;  %v2471_v8 = vld [vmem:[#allocation40_spill] sm:$0xff] }
  0xf3   :  { %643 = vmatpush.msrb.mxu2 %v2442_v41  ;;  %663 = vmatpush.msrb.mxu3 %v1580_v19  ;;  %v2472_v41 = vld [vmem:[#allocation46_spill] sm:$0xff] }
  0xf4   :  { %604 = vmatpush.msrb.mxu0 %v1543_v6  ;;  %624 = vmatpush.msrb.mxu1 %v2443_v0  ;;  %v2448_v6 = vld [vmem:[#allocation37_spill] sm:$0xff]  ;;  %v302_v0 = vld [vmem:[#allocation2 + $0x40] sm:$0xff] }
  0xf5   :  { %644 = vmatpush.msrb.mxu2 %v2444_v15  ;;  %664 = vmatpush.msrb.mxu3 %v1592_v23  ;;  %v303_v15 = vld [vmem:[#allocation2 + $0x48] sm:$0xff] }
  0xf6   :  { %605 = vmatpush.msrb.mxu0 %v2447_v36  ;;  %625 = vmatpush.msrb.mxu1 %v1554_v10  ;;  %v2450_v10 = vld [vmem:[#allocation23_spill] sm:$0xff] }
  0xf7   :  { %645 = vmatpush.msrb.mxu2 %v1558_v11  ;;  %665 = vmatpush.msrb.mxu3 %v1604_v27  ;;  %v2451_v11 = vld [vmem:[#allocation24_spill] sm:$0xff] }
  0xf8   :  { %606 = vmatpush.msrb.mxu0 %v1561_v12  ;;  %626 = vmatpush.msrb.mxu1 %v1563_v13  ;;  %v2452_v12 = vld [vmem:[#allocation41_spill] sm:$0xff] }
  0xf9   :  { %646 = vmatpush.msrb.mxu2 %v1567_v14  ;;  %666 = vmatpush.msrb.mxu3 %v1616_v31  ;;  %v2453_v13 = vld [vmem:[#allocation25_spill] sm:$0xff]  ;;  %v2454_v14 = vld [vmem:[#allocation26_spill] sm:$0xff] }
  0xfa   :  { %607 = vmatpush.msrb.mxu0 %v2445_v18  ;;  %627 = vmatpush.msrb.mxu1 %v1572_v16  ;;  %v2455_v16 = vld [vmem:[#allocation27_spill] sm:$0xff] }
  0xfb   :  { %647 = vmatpush.msrb.mxu2 %v2446_v9  ;;  %667 = vmatpush.msrb.mxu3 %v1628_v35  ;;  %v2449_v9 = vld [vmem:[#allocation22_spill] sm:$0xff] }
  0xfc   :  { %608 = vmatpush.msrb.mxu0 %v1583_v20  ;;  %628 = vmatpush.msrb.mxu1 %v1585_v21  ;;  %v2456_v20 = vld [vmem:[#allocation42_spill] sm:$0xff]  ;;  %v2457_v21 = vld [vmem:[#allocation28_spill] sm:$0xff] }
  0xfd   :  { %648 = vmatpush.msrb.mxu2 %v1590_v22  ;;  %668 = vmatpush.msrb.mxu3 %v1640_v40  ;;  %v2458_v22 = vld [vmem:[#allocation29_spill] sm:$0xff] }
  0xfe   :  { %609 = vmatpush.msrb.mxu0 %v1595_v24  ;;  %629 = vmatpush.msrb.mxu1 %v1597_v25  ;;  %v2459_v24 = vld [vmem:[#allocation30_spill] sm:$0xff]  ;;  %v2460_v25 = vld [vmem:[#allocation43_spill] sm:$0xff] }
  0xff   :  { %649 = vmatpush.msrb.mxu2 %v1602_v26  ;;  %669 = vmatpush.msrb.mxu3 %v1652_v47  ;;  %v2461_v26 = vld [vmem:[#allocation31_spill] sm:$0xff] }
 0x100   :  { %610 = vmatpush.msrb.mxu0 %v1607_v28  ;;  %630 = vmatpush.msrb.mxu1 %v1609_v29  ;;  %v2462_v28 = vld [vmem:[#allocation32_spill] sm:$0xff]  ;;  %v2463_v29 = vld [vmem:[#allocation33_spill] sm:$0xff] }
 0x101   :  { %650 = vmatpush.msrb.mxu2 %v1614_v30  ;;  %670 = vmatpush.msrb.mxu3 %v1679_v56 }
 0x102   :  { %611 = vmatpush.msrb.mxu0 %v1619_v32  ;;  %631 = vmatpush.msrb.mxu1 %v1621_v33 }
 0x103   :  { %651 = vmatpush.msrb.mxu2 %v1626_v34  ;;  %671 = vmatpush.msrb.mxu3 %v2448_v6 }
 0x104   :  { %612 = vmatpush.msrb.mxu0 %v2449_v9  ;;  %632 = vmatpush.msrb.mxu1 %v2450_v10 }
 0x105   :  { %652 = vmatpush.msrb.mxu2 %v2451_v11  ;;  %672 = vmatpush.msrb.mxu3 %v2452_v12 }
 0x106   :  { %613 = vmatpush.msrb.mxu0 %v2453_v13  ;;  %633 = vmatpush.msrb.mxu1 %v2454_v14 }
 0x107   :  { %653 = vmatpush.msrb.mxu2 %v2455_v16  ;;  %673 = vmatpush.msrb.mxu3 %v2456_v20 }
 0x108   :  { %614 = vmatpush.msrb.mxu0 %v2457_v21  ;;  %634 = vmatpush.msrb.mxu1 %v2458_v22 }
 0x109   :  { %654 = vmatpush.msrb.mxu2 %v2459_v24  ;;  %674 = vmatpush.msrb.mxu3 %v2460_v25 }
 0x10a   :  { %615 = vmatpush.msrb.mxu0 %v2461_v26  ;;  %635 = vmatpush.msrb.mxu1 %v2462_v28 }
 0x10b   :  { %655 = vmatpush.msrb.mxu2 %v2463_v29  ;;  %675 = vmatpush.msrb.mxu3 %v2464_v43 }
 0x10c   :  { %616 = vmatpush.msrb.mxu0 %v2465_v59  ;;  %636 = vmatpush.msrb.mxu1 %v2466_v38 }
 0x10d   :  { %656 = vmatpush.msrb.mxu2 %v2467_v4  ;;  %676 = vmatpush.msrb.mxu3 %v2468_v7 }
 0x10e   :  { %617 = vmatpush.msrb.mxu0 %v2469_v5  ;;  %637 = vmatpush.msrb.mxu1 %v2470_v60 }
 0x10f   :  { %657 = vmatpush.msrb.mxu2 %v2471_v8  ;;  %677 = vmatpush.msrb.mxu3 %v2472_v41 }
 0x16b   :  { %v323_v18 = vpop.f32.mrf.mxu0  ;;  %v343_v52 = vpop.f32.mrf.mxu1 }
 0x16c   :  { %v324_v62 = vadd.f32 %v323_v18, %v302_v0  ;;  %v344_v3 = vadd.f32 %v343_v52, %v303_v15 }
 0x16e   :  { %v1213_v2 = vmul.f32 -1.442695, %v324_v62  ;;  %v1214_v44 = vmul.f32 -1.442695, %v344_v3 }
 0x170   :  { %1264 = vpow2.f32 %v1213_v2 }
 0x171   :  { %1266 = vpow2.f32 %v1214_v44 }
 0x172   :  { %v363_v57 = vpop.f32.mrf.mxu2  ;;  %v383_v61 = vpop.f32.mrf.mxu3 }
 0x173   :  { %v364_v53 = vadd.f32 %v363_v57, %v304_v46  ;;  %v384_v39 = vadd.f32 %v383_v61, %v305_v1 }
 0x175   :  { %v1215_v50 = vmul.f32 -1.442695, %v364_v53 }
 0x176   :  { %v1265_v55 = vpop.eup %1264 }
 0x177   :  { %v1267_v58 = vpop.eup %1266  ;;  %v389_v49 = vadd.f32 1.0, %v1265_v55  ;;  %1268 = vpow2.f32 %v1215_v50 }
 0x178   :  { %v408_v48 = vadd.f32 1.0, %v1267_v58 }
 0x179   :  { %1270 = vrcp.f32 %v389_v49  ;;  %v401_v18 = vand.u32 2147483648, %v389_v49  ;;  %v399_v3 = vand.u32 2147483647, %v389_v49  ;;  %vm395_vm6 = vweird.f32 %v389_v49 }
 0x17a   :  { %1272 = vrcp.f32 %v408_v48  ;;  %v420_v52 = vand.u32 2147483648, %v408_v48  ;;  %v418_v44 = vand.u32 2147483647, %v408_v48  ;;  %vm414_vm7 = vweird.f32 %v408_v48 }
 0x17b   :  { %v402_v50 = vor.u32 1.1754944e-38, %v401_v18  ;;  %vm400_vm10 = vcmp.eq.f32.partialorder %v399_v3, 8.507059e+37 }
 0x17c   :  { %v421_v58 = vor.u32 1.1754944e-38, %v420_v52  ;;  %vm419_vm11 = vcmp.eq.f32.partialorder %v418_v44, 8.507059e+37 }
 0x17d   :  { %v1269_v63 = vpop.eup %1268 }
 0x17e   :  { %v427_v42 = vadd.f32 1.0, %v1269_v63 }
 0x17f   :  { %v1271_v51 = vpop.eup %1270 }
 0x180   :  { %v1273_v54 = vpop.eup %1272  ;;  %v391_v37 = vmul.f32 %v1271_v51, %v389_v49  ;;  %1274 = vrcp.f32 %v427_v42  ;;  %vm396_vm4 = vweird.f32 %v1271_v51  ;;  %v439_v18 = vand.u32 2147483648, %v427_v42 }
 0x181   :  { %v410_v36 = vmul.f32 %v1273_v54, %v408_v48  ;;  %1276 = vtanh.f32 %v384_v39  ;;  %vm415_vm5 = vweird.f32 %v1273_v54  ;;  %vm397_vm8 = vmor %vm395_vm6, %vm396_vm4  ;;  %vm433_vm13 = vweird.f32 %v427_v42 }
 0x182   :  { %v392_v0 = vsub.f32 1.0, %v391_v37  ;;  %vm416_vm9 = vmor %vm414_vm7, %vm415_vm5  ;;  %v440_v3 = vor.u32 1.1754944e-38, %v439_v18  ;;  %v2029_v18 = vld [vmem:[#allocation5 + $0xe0] sm:$0xff] }
 0x183   :  { %v411_v15 = vsub.f32 1.0, %v410_v36 }
 0x184   :  { %v393_v62 = vmul.f32 %v1271_v51, %v392_v0 }
 0x185   :  { %v412_v2 = vmul.f32 %v1273_v54, %v411_v15 }
 0x186   :  { %v1275_v46 = vpop.eup %1274  ;;  %v394_v57 = vadd.f32 %v1271_v51, %v393_v62 }
 0x187   :  { %v429_v53 = vmul.f32 %v1275_v46, %v427_v42  ;;  %v413_v55 = vadd.f32 %v1273_v54, %v412_v2  ;;  %v1277_v61 = vpop.eup %1276  ;;  %vm434_vm12 = vweird.f32 %v1275_v46 }
 0x188   :  { %v398_v1 = vsel %vm397_vm8, %v1271_v51, %v394_v57  ;;  %v437_v51 = vand.u32 2147483647, %v427_v42  ;;  %vm435_vm14 = vmor %vm433_vm13, %vm434_vm12  ;;  %v1952_v57 = vld [vmem:[#allocation5 + $0x1e8] sm:$0xff]  ;;  %v1955_v42 = vld [vmem:[#allocation5 + $0x1f0] sm:$0xff] }
 0x189   :  { %v430_v63 = vsub.f32 1.0, %v429_v53  ;;  %v403_v39 = vsel %vm400_vm10, %v402_v50, %v398_v1  ;;  %v417_v37 = vsel %vm416_vm9, %v1273_v54, %v413_v55  ;;  %v1962_v53 = vld [vmem:[#allocation5 + $0x1c8] sm:$0xff]  ;;  %v1965_v50 = vld [vmem:[#allocation5 + $0x1d0] sm:$0xff]  ;;  %v1969_v55 = vld [vmem:[#allocation5 + $0x1a0] sm:$0xff] }
 0x18a   :  { %v422_v36 = vsel %vm419_vm11, %v421_v58, %v417_v37  ;;  %v445_v0 = vmul.f32 %v1277_v61, %v403_v39  ;;  %vm438_vm15 = vcmp.eq.f32.partialorder %v437_v51, 8.507059e+37  ;;  %v1972_v58 = vld [vmem:[#allocation5 + $0x1a8] sm:$0xff]  ;;  %v1979_v1 = vld [vmem:[#allocation5 + $0x180] sm:$0xff] }
 0x18b   :  { %v444_v15 = vmul.f32 %v422_v36, %v1878_v45  ;;  %v431_v62 = vmul.f32 %v1275_v46, %v430_v63  ;;  %v1949_v45 = vld [vmem:[#allocation5 + $0x1e0] sm:$0xff]  ;;  %v1982_v61 = vld [vmem:[#allocation5 + $0x188] sm:$0xff] }
 0x18c   :  { %v1989_v63 = vld [vmem:[#allocation5 + $0x160] sm:$0xff]  ;;  %v1992_v39 = vld [vmem:[#allocation5 + $0x168] sm:$0xff] }
 0x18d   :  { %v1946_v49 = vadd.f32 %v445_v0, %v444_v15  ;;  %v432_v48 = vadd.f32 %v1275_v46, %v431_v62  ;;  %v1999_v37 = vld [vmem:[#allocation5 + $0x140] sm:$0xff]  ;;  %v2002_v36 = vld [vmem:[#allocation5 + $0x148] sm:$0xff] }
 0x18e   :  { %v2009_v0 = vld [vmem:[#allocation5 + $0x120] sm:$0xff]  ;;  %v2012_v15 = vld [vmem:[#allocation5 + $0x128] sm:$0xff] }
 0x18f   :  { %1278 = vtanh.f32 %v1946_v49  ;;  %v436_v52 = vsel %vm435_vm14, %v1275_v46, %v432_v48  ;;  %v1959_v46 = vld [vmem:[#allocation5 + $0x1c0] sm:$0xff]  ;;  %v2022_v48 = vld [vmem:[#allocation5 + $0x108] sm:$0xff] }
 0x190   :  { %v441_v2 = vsel %vm438_vm15, %v440_v3, %v436_v52  ;;  %v2019_v62 = vld [vmem:[#allocation5 + $0x100] sm:$0xff]  ;;  %v2032_v51 = vld [vmem:[#allocation5 + $0xe8] sm:$0xff] }
 0x195   :  { %v1279_v54 = vpop.eup %1278 }
 0x196   :  { %v448_v44 = vmul.f32 %v1279_v54, %v441_v2 }
 0x198   :  { %470 = vmatmul.f32.vlgmr.msra.gmra.mxu0 %v448_v44  ;;  %490 = vmatmul.f32.vlgmr.msra.gmra.mxu1 %v448_v44 }
 0x199   :  { %510 = vmatmul.f32.vlgmr.msra.gmra.mxu2 %v448_v44  ;;  %530 = vmatmul.f32.vlgmr.msra.gmra.mxu3 %v448_v44 }
 0x19a   :  { %750 = vmatpush.msra.mxu0 %v1949_v45  ;;  %770 = vmatpush.msra.mxu1 %v1952_v57 }
 0x19b   :  { %790 = vmatpush.msra.mxu2 %v1955_v42  ;;  %810 = vmatpush.msra.mxu3 %v1574_v17  ;;  %v1975_v17 = vld [vmem:[#allocation5 + $0x1b0] sm:$0xff] }
 0x19c   :  { %751 = vmatpush.msra.mxu0 %v1959_v46  ;;  %771 = vmatpush.msra.mxu1 %v1962_v53 }
 0x19d   :  { %791 = vmatpush.msra.mxu2 %v1965_v50  ;;  %811 = vmatpush.msra.mxu3 %v1580_v19  ;;  %v1985_v19 = vld [vmem:[#allocation5 + $0x190] sm:$0xff] }
 0x19e   :  { %752 = vmatpush.msra.mxu0 %v1969_v55  ;;  %772 = vmatpush.msra.mxu1 %v1972_v58 }
 0x19f   :  { %792 = vmatpush.msra.mxu2 %v1975_v17  ;;  %812 = vmatpush.msra.mxu3 %v1592_v23  ;;  %v1995_v23 = vld [vmem:[#allocation5 + $0x170] sm:$0xff] }
 0x1a0   :  { %753 = vmatpush.msra.mxu0 %v1979_v1  ;;  %773 = vmatpush.msra.mxu1 %v1982_v61 }
 0x1a1   :  { %793 = vmatpush.msra.mxu2 %v1985_v19  ;;  %813 = vmatpush.msra.mxu3 %v1604_v27  ;;  %v2005_v27 = vld [vmem:[#allocation5 + $0x150] sm:$0xff] }
 0x1a2   :  { %754 = vmatpush.msra.mxu0 %v1989_v63  ;;  %774 = vmatpush.msra.mxu1 %v1992_v39 }
 0x1a3   :  { %794 = vmatpush.msra.mxu2 %v1995_v23  ;;  %814 = vmatpush.msra.mxu3 %v1616_v31  ;;  %v2015_v31 = vld [vmem:[#allocation5 + $0x130] sm:$0xff] }
 0x1a4   :  { %755 = vmatpush.msra.mxu0 %v1999_v37  ;;  %775 = vmatpush.msra.mxu1 %v2002_v36 }
 0x1a5   :  { %795 = vmatpush.msra.mxu2 %v2005_v27  ;;  %815 = vmatpush.msra.mxu3 %v1628_v35  ;;  %v2025_v35 = vld [vmem:[#allocation5 + $0x110] sm:$0xff] }
 0x1a6   :  { %756 = vmatpush.msra.mxu0 %v2009_v0  ;;  %776 = vmatpush.msra.mxu1 %v2012_v15 }
 0x1a7   :  { %796 = vmatpush.msra.mxu2 %v2015_v31  ;;  %816 = vmatpush.msra.mxu3 %v1640_v40 }
 0x1a8   :  { %757 = vmatpush.msra.mxu0 %v2019_v62  ;;  %777 = vmatpush.msra.mxu1 %v2022_v48 }
 0x1a9   :  { %797 = vmatpush.msra.mxu2 %v2025_v35  ;;  %817 = vmatpush.msra.mxu3 %v1652_v47 }
 0x1aa   :  { %758 = vmatpush.msra.mxu0 %v2029_v18  ;;  %778 = vmatpush.msra.mxu1 %v2032_v51 }
 0x1ab   :  { %798 = vmatpush.msra.mxu2 %v1614_v30  ;;  %818 = vmatpush.msra.mxu3 %v1679_v56  ;;  %v450_v30 = vld [vmem:[#allocation2 + $0x60] sm:$0xff] }
 0x1ac   :  { %759 = vmatpush.msra.mxu0 %v1619_v32  ;;  %779 = vmatpush.msra.mxu1 %v1621_v33  ;;  %v451_v32 = vld [vmem:[#allocation2 + $0x68] sm:$0xff] }
 0x1ad   :  { %799 = vmatpush.msra.mxu2 %v1626_v34  ;;  %819 = vmatpush.msra.mxu3 %v2448_v6 }
 0x1ae   :  { %760 = vmatpush.msra.mxu0 %v2449_v9  ;;  %780 = vmatpush.msra.mxu1 %v2450_v10  ;;  %v452_v9 = vld [vmem:[#allocation2 + $0x70] sm:$0xff] }
 0x1af   :  { %800 = vmatpush.msra.mxu2 %v2451_v11  ;;  %820 = vmatpush.msra.mxu3 %v2452_v12 }
 0x1b0   :  { %761 = vmatpush.msra.mxu0 %v2453_v13  ;;  %781 = vmatpush.msra.mxu1 %v2454_v14 }
 0x1b1   :  { %801 = vmatpush.msra.mxu2 %v2455_v16  ;;  %821 = vmatpush.msra.mxu3 %v2456_v20 }
 0x1b2   :  { %762 = vmatpush.msra.mxu0 %v2457_v21  ;;  %782 = vmatpush.msra.mxu1 %v2458_v22  ;;  %v453_v21 = vld [vmem:[#allocation2 + $0x78] sm:$0xff] }
 0x1b3   :  { %802 = vmatpush.msra.mxu2 %v2459_v24  ;;  %822 = vmatpush.msra.mxu3 %v2460_v25 }
 0x1b4   :  { %763 = vmatpush.msra.mxu0 %v2461_v26  ;;  %783 = vmatpush.msra.mxu1 %v2462_v28 }
 0x1b5   :  { %803 = vmatpush.msra.mxu2 %v2463_v29  ;;  %823 = vmatpush.msra.mxu3 %v2464_v43 }
 0x1b6   :  { %764 = vmatpush.msra.mxu0 %v2465_v59  ;;  %784 = vmatpush.msra.mxu1 %v2466_v38 }
 0x1b7   :  { %804 = vmatpush.msra.mxu2 %v2467_v4  ;;  %824 = vmatpush.msra.mxu3 %v2468_v7 }
 0x1b8   :  { %765 = vmatpush.msra.mxu0 %v2469_v5  ;;  %785 = vmatpush.msra.mxu1 %v2470_v60 }
 0x1b9   :  { %805 = vmatpush.msra.mxu2 %v2471_v8  ;;  %825 = vmatpush.msra.mxu3 %v2472_v41 }
 0x215   :  { %v471_v33 = vpop.f32.mrf.mxu0  ;;  %v491_v34 = vpop.f32.mrf.mxu1 }
 0x216   :  { %v472_v40 = vadd.f32 %v471_v33, %v450_v30  ;;  %v492_v47 = vadd.f32 %v491_v34, %v451_v32 }
 0x218   :  { %v1216_v56 = vmul.f32 -1.442695, %v472_v40  ;;  %v1217_v6 = vmul.f32 -1.442695, %v492_v47 }
 0x21a   :  { %1280 = vpow2.f32 %v1216_v56 }
 0x21b   :  { %1282 = vpow2.f32 %v1217_v6 }
 0x21c   :  { %v511_v10 = vpop.f32.mrf.mxu2  ;;  %v531_v22 = vpop.f32.mrf.mxu3 }
 0x21d   :  { %v512_v11 = vadd.f32 %v511_v10, %v452_v9  ;;  %v532_v28 = vadd.f32 %v531_v22, %v453_v21 }
 0x21f   :  { %v1218_v12 = vmul.f32 -1.442695, %v512_v11 }
 0x220   :  { %v1281_v13 = vpop.eup %1280 }
 0x221   :  { %v1283_v14 = vpop.eup %1282  ;;  %v537_v16 = vadd.f32 1.0, %v1281_v13  ;;  %1284 = vpow2.f32 %v1218_v12 }
 0x222   :  { %v556_v20 = vadd.f32 1.0, %v1283_v14 }
 0x223   :  { %1286 = vrcp.f32 %v537_v16  ;;  %v549_v7 = vand.u32 2147483648, %v537_v16  ;;  %v547_v8 = vand.u32 2147483647, %v537_v16  ;;  %vm543_vm2 = vweird.f32 %v537_v16 }
 0x224   :  { %1288 = vrcp.f32 %v556_v20  ;;  %v568_v5 = vand.u32 2147483648, %v556_v20  ;;  %v566_v52 = vand.u32 2147483647, %v556_v20  ;;  %vm562_vm3 = vweird.f32 %v556_v20 }
 0x225   :  { %v550_v44 = vor.u32 1.1754944e-38, %v549_v7  ;;  %vm548_vm6 = vcmp.eq.f32.partialorder %v547_v8, 8.507059e+37  ;;  %v2119_v7 = vld [vmem:[#allocation5 + $0xf0] sm:$0xff]  ;;  %v2128_v8 = vld [vmem:[#allocation5 + $0xc8] sm:$0xff] }
 0x226   :  { %v569_v32 = vor.u32 1.1754944e-38, %v568_v5  ;;  %vm567_vm7 = vcmp.eq.f32.partialorder %v566_v52, 8.507059e+37  ;;  %v2122_v5 = vld [vmem:[#allocation5 + $0xf8] sm:$0xff] }
 0x227   :  { %v1285_v24 = vpop.eup %1284  ;;  %v2134_v52 = vld [vmem:[#allocation5 + $0xd8] sm:$0xff] }
 0x228   :  { %v575_v25 = vadd.f32 1.0, %v1285_v24  ;;  %2474 = vst [vmem:[#allocation12_spill] sm:$0xff] %v2134_v52 }
 0x229   :  { %v1287_v26 = vpop.eup %1286 }
 0x22a   :  { %v1289_v29 = vpop.eup %1288  ;;  %v539_v43 = vmul.f32 %v1287_v26, %v537_v16  ;;  %1290 = vrcp.f32 %v575_v25  ;;  %vm544_vm0 = vweird.f32 %v1287_v26  ;;  %v587_v14 = vand.u32 2147483648, %v575_v25 }
 0x22b   :  { %v558_v59 = vmul.f32 %v1289_v29, %v556_v20  ;;  %1292 = vtanh.f32 %v532_v28  ;;  %vm563_vm1 = vweird.f32 %v1289_v29  ;;  %vm545_vm4 = vmor %vm543_vm2, %vm544_vm0  ;;  %vm581_vm9 = vweird.f32 %v575_v25  ;;  %v2084_v28 = vld [vmem:[#allocation5 + $0x1b8] sm:$0xff] }
 0x22c   :  { %v540_v38 = vsub.f32 1.0, %v539_v43  ;;  %vm564_vm5 = vmor %vm562_vm3, %vm563_vm1  ;;  %v585_v16 = vand.u32 2147483647, %v575_v25  ;;  %v588_v21 = vor.u32 1.1754944e-38, %v587_v14  ;;  %v2096_v43 = vld [vmem:[#allocation5 + $0x178] sm:$0xff]  ;;  %v2185_v14 = vld [vmem:[#allocation5 + $0x20] sm:$0xff] }
 0x22d   :  { %v559_v4 = vsub.f32 1.0, %v558_v59  ;;  %v2102_v59 = vld [vmem:[#allocation5 + $0x158] sm:$0xff]  ;;  %2491 = vst [vmem:[#allocation27_spill] sm:$0xff] %v2185_v14 }
 0x22e   :  { %v541_v60 = vmul.f32 %v1287_v26, %v540_v38  ;;  %vm586_vm11 = vcmp.eq.f32.partialorder %v585_v16, 8.507059e+37  ;;  %v2108_v38 = vld [vmem:[#allocation5 + $0x138] sm:$0xff]  ;;  %v2188_v16 = vld [vmem:[#allocation5 + $0x28] sm:$0xff] }
 0x22f   :  { %v560_v41 = vmul.f32 %v1289_v29, %v559_v4  ;;  %v2114_v4 = vld [vmem:[#allocation5 + $0x118] sm:$0xff]  ;;  %2492 = vst [vmem:[#allocation42_spill] sm:$0xff] %v2188_v16 }
 0x230   :  { %v1291_v3 = vpop.eup %1290  ;;  %v542_v54 = vadd.f32 %v1287_v26, %v541_v60  ;;  %v2125_v60 = vld [vmem:[#allocation5 + $0xc0] sm:$0xff] }
 0x231   :  { %v577_v2 = vmul.f32 %v1291_v3, %v575_v25  ;;  %v561_v30 = vadd.f32 %v1289_v29, %v560_v41  ;;  %v1293_v34 = vpop.eup %1292  ;;  %vm582_vm8 = vweird.f32 %v1291_v3  ;;  %v2078_v25 = vld [vmem:[#allocation5 + $0x1d8] sm:$0xff]  ;;  %v2131_v41 = vld [vmem:[#allocation5 + $0xd0] sm:$0xff] }
 0x232   :  { %v546_v33 = vsel %vm545_vm4, %v1287_v26, %v542_v54  ;;  %vm583_vm10 = vmor %vm581_vm9, %vm582_vm8  ;;  %2473 = vst [vmem:[#allocation11_spill] sm:$0xff] %v2131_v41  ;;  %v2140_v54 = vld [vmem:[#allocation5 + $0xa8] sm:$0xff] }
 0x233   :  { %v578_v40 = vsub.f32 1.0, %v577_v2  ;;  %v551_v47 = vsel %vm548_vm6, %v550_v44, %v546_v33  ;;  %v565_v56 = vsel %vm564_vm5, %v1289_v29, %v561_v30  ;;  %v2090_v29 = vld [vmem:[#allocation5 + $0x198] sm:$0xff]  ;;  %2476 = vst [vmem:[#allocation14_spill] sm:$0xff] %v2140_v54  ;;  %v2143_v2 = vld [vmem:[#allocation5 + $0xb0] sm:$0xff]  ;;  %v2149_v30 = vld [vmem:[#allocation5 + $0x80] sm:$0xff] }
 0x234   :  { %v570_v6 = vsel %vm567_vm7, %v569_v32, %v565_v56  ;;  %v593_v9 = vmul.f32 %v1293_v34, %v551_v47  ;;  %2477 = vst [vmem:[#allocation15_spill] sm:$0xff] %v2143_v2  ;;  %v2146_v44 = vld [vmem:[#allocation5 + $0xb8] sm:$0xff]  ;;  %v2152_v32 = vld [vmem:[#allocation5 + $0x88] sm:$0xff]  ;;  %v2155_v33 = vld [vmem:[#allocation5 + $0x90] sm:$0xff] }
 0x235   :  { %v592_v10 = vmul.f32 %v570_v6, %v1946_v49  ;;  %v579_v11 = vmul.f32 %v1291_v3, %v578_v40  ;;  %v2072_v49 = vld [vmem:[#allocation5 + $0x1f8] sm:$0xff]  ;;  %2478 = vst [vmem:[#allocation16_spill] sm:$0xff] %v2146_v44  ;;  %v2161_v40 = vld [vmem:[#allocation5 + $0x60] sm:$0xff]  ;;  %v2164_v47 = vld [vmem:[#allocation5 + $0x68] sm:$0xff] }
 0x236   :  { %2479 = vst [vmem:[#allocation17_spill] sm:$0xff] %v2149_v30  ;;  %v2158_v34 = vld [vmem:[#allocation5 + $0x98] sm:$0xff]  ;;  %v2167_v56 = vld [vmem:[#allocation5 + $0x70] sm:$0xff] }
 0x237   :  { %v2066_v12 = vadd.f32 %v593_v9, %v592_v10  ;;  %v580_v13 = vadd.f32 %v1291_v3, %v579_v11  ;;  %2480 = vst [vmem:[#allocation18_spill] sm:$0xff] %v2152_v32  ;;  %v2170_v6 = vld [vmem:[#allocation5 + $0x78] sm:$0xff]  ;;  %v2173_v9 = vld [vmem:[#allocation5 + $0x40] sm:$0xff]  ;;  %v2176_v10 = vld [vmem:[#allocation5 + $0x48] sm:$0xff] }
 0x238   :  { %2481 = vst [vmem:[#allocation20_spill] sm:$0xff] %v2155_v33  ;;  %v2179_v11 = vld [vmem:[#allocation5 + $0x50] sm:$0xff] }
 0x239   :  { %1294 = vtanh.f32 %v2066_v12  ;;  %v584_v20 = vsel %vm583_vm10, %v1291_v3, %v580_v13  ;;  %v2137_v3 = vld [vmem:[#allocation5 + $0xa0] sm:$0xff]  ;;  %2482 = vst [vmem:[#allocation21_spill] sm:$0xff] %v2158_v34  ;;  %v2182_v13 = vld [vmem:[#allocation5 + $0x58] sm:$0xff] }
 0x23a   :  { %v589_v24 = vsel %vm586_vm11, %v588_v21, %v584_v20  ;;  %2475 = vst [vmem:[#allocation13_spill] sm:$0xff] %v2137_v3  ;;  %v2191_v20 = vld [vmem:[#allocation5 + $0x30] sm:$0xff]  ;;  %v2194_v21 = vld [vmem:[#allocation5 + $0x38] sm:$0xff] }
 0x23b   :  { %2483 = vst [vmem:[#allocation19_spill] sm:$0xff] %v2161_v40 }
 0x23c   :  { %2484 = vst [vmem:[#allocation37_spill] sm:$0xff] %v2164_v47 }
 0x23d   :  { %2485 = vst [vmem:[#allocation22_spill] sm:$0xff] %v2167_v56 }
 0x23e   :  { %2486 = vst [vmem:[#allocation23_spill] sm:$0xff] %v2170_v6 }
 0x23f   :  { %v1295_v22 = vpop.eup %1294  ;;  %2487 = vst [vmem:[#allocation24_spill] sm:$0xff] %v2173_v9 }
 0x240   :  { %v596_v26 = vmul.f32 %v1295_v22, %v589_v24  ;;  %2488 = vst [vmem:[#allocation41_spill] sm:$0xff] %v2176_v10  ;;  %v2197_v22 = vld [vmem:[#allocation5] sm:$0xff]  ;;  %v2200_v24 = vld [vmem:[#allocation5 + $0x8] sm:$0xff] }
 0x241   :  { %2489 = vst [vmem:[#allocation25_spill] sm:$0xff] %v2179_v11 }
 0x242   :  { %618 = vmatmul.f32.vlgmr.msrb.gmra.mxu0 %v596_v26  ;;  %638 = vmatmul.f32.vlgmr.msrb.gmra.mxu1 %v596_v26  ;;  %2490 = vst [vmem:[#allocation26_spill] sm:$0xff] %v2182_v13 }
 0x243   :  { %658 = vmatmul.f32.vlgmr.msrb.gmra.mxu2 %v596_v26  ;;  %678 = vmatmul.f32.vlgmr.msrb.gmra.mxu3 %v596_v26  ;;  %2493 = vst [vmem:[#allocation28_spill] sm:$0xff] %v2191_v20  ;;  %v2203_v26 = vld [vmem:[#allocation5 + $0x10] sm:$0xff] }
 0x244   :  { %898 = vmatpush.msrb.mxu0 %v1949_v45  ;;  %918 = vmatpush.msrb.mxu1 %v1952_v57  ;;  %2494 = vst [vmem:[#allocation29_spill] sm:$0xff] %v2194_v21 }
 0x245   :  { %938 = vmatpush.msrb.mxu2 %v1955_v42  ;;  %958 = vmatpush.msrb.mxu3 %v2072_v49  ;;  %2495 = vst [vmem:[#allocation30_spill] sm:$0xff] %v2197_v22 }
 0x246   :  { %899 = vmatpush.msrb.mxu0 %v1959_v46  ;;  %919 = vmatpush.msrb.mxu1 %v1962_v53  ;;  %2496 = vst [vmem:[#allocation43_spill] sm:$0xff] %v2200_v24 }
 0x247   :  { %939 = vmatpush.msrb.mxu2 %v1965_v50  ;;  %959 = vmatpush.msrb.mxu3 %v2078_v25  ;;  %2497 = vst [vmem:[#allocation31_spill] sm:$0xff] %v2203_v26 }
 0x248   :  { %900 = vmatpush.msrb.mxu0 %v1969_v55  ;;  %920 = vmatpush.msrb.mxu1 %v1972_v58 }
 0x249   :  { %940 = vmatpush.msrb.mxu2 %v1975_v17  ;;  %960 = vmatpush.msrb.mxu3 %v2084_v28 }
 0x24a   :  { %901 = vmatpush.msrb.mxu0 %v1979_v1  ;;  %921 = vmatpush.msrb.mxu1 %v1982_v61 }
 0x24b   :  { %941 = vmatpush.msrb.mxu2 %v1985_v19  ;;  %961 = vmatpush.msrb.mxu3 %v2090_v29 }
 0x24c   :  { %902 = vmatpush.msrb.mxu0 %v1989_v63  ;;  %922 = vmatpush.msrb.mxu1 %v1992_v39 }
 0x24d   :  { %942 = vmatpush.msrb.mxu2 %v1995_v23  ;;  %962 = vmatpush.msrb.mxu3 %v2096_v43 }
 0x24e   :  { %903 = vmatpush.msrb.mxu0 %v1999_v37  ;;  %923 = vmatpush.msrb.mxu1 %v2002_v36 }
 0x24f   :  { %943 = vmatpush.msrb.mxu2 %v2005_v27  ;;  %963 = vmatpush.msrb.mxu3 %v2102_v59 }
 0x250   :  { %904 = vmatpush.msrb.mxu0 %v2009_v0  ;;  %924 = vmatpush.msrb.mxu1 %v2012_v15 }
 0x251   :  { %944 = vmatpush.msrb.mxu2 %v2015_v31  ;;  %964 = vmatpush.msrb.mxu3 %v2108_v38 }
 0x252   :  { %905 = vmatpush.msrb.mxu0 %v2019_v62  ;;  %925 = vmatpush.msrb.mxu1 %v2022_v48 }
 0x253   :  { %945 = vmatpush.msrb.mxu2 %v2025_v35  ;;  %965 = vmatpush.msrb.mxu3 %v2114_v4 }
 0x254   :  { %906 = vmatpush.msrb.mxu0 %v2029_v18  ;;  %926 = vmatpush.msrb.mxu1 %v2032_v51 }
 0x255   :  { %946 = vmatpush.msrb.mxu2 %v2119_v7  ;;  %966 = vmatpush.msrb.mxu3 %v2122_v5 }
 0x256   :  { %907 = vmatpush.msrb.mxu0 %v2125_v60  ;;  %927 = vmatpush.msrb.mxu1 %v2128_v8 }
 0x257   :  { %947 = vmatpush.msrb.mxu2 %v2131_v41  ;;  %967 = vmatpush.msrb.mxu3 %v2134_v52 }
 0x258   :  { %908 = vmatpush.msrb.mxu0 %v2137_v3  ;;  %928 = vmatpush.msrb.mxu1 %v2140_v54 }
 0x259   :  { %948 = vmatpush.msrb.mxu2 %v2143_v2  ;;  %968 = vmatpush.msrb.mxu3 %v2146_v44 }
 0x25a   :  { %909 = vmatpush.msrb.mxu0 %v2149_v30  ;;  %929 = vmatpush.msrb.mxu1 %v2152_v32 }
 0x25b   :  { %949 = vmatpush.msrb.mxu2 %v2155_v33  ;;  %969 = vmatpush.msrb.mxu3 %v2158_v34 }
 0x25c   :  { %910 = vmatpush.msrb.mxu0 %v2161_v40  ;;  %930 = vmatpush.msrb.mxu1 %v2164_v47 }
 0x25d   :  { %950 = vmatpush.msrb.mxu2 %v2167_v56  ;;  %970 = vmatpush.msrb.mxu3 %v2170_v6  ;;  %v600_v6 = vld [vmem:[#allocation2 + $0x90] sm:$0xff] }
 0x25e   :  { %911 = vmatpush.msrb.mxu0 %v2173_v9  ;;  %931 = vmatpush.msrb.mxu1 %v2176_v10 }
 0x25f   :  { %951 = vmatpush.msrb.mxu2 %v2179_v11  ;;  %971 = vmatpush.msrb.mxu3 %v2182_v13 }
 0x260   :  { %912 = vmatpush.msrb.mxu0 %v2185_v14  ;;  %932 = vmatpush.msrb.mxu1 %v2188_v16  ;;  %v2206_v16 = vld [vmem:[#allocation5 + $0x18] sm:$0xff]  ;;  %v599_v14 = vld [vmem:[#allocation2 + $0x88] sm:$0xff] }
 0x261   :  { %952 = vmatpush.msrb.mxu2 %v2191_v20  ;;  %972 = vmatpush.msrb.mxu3 %v2194_v21  ;;  %2498 = vst [vmem:[#allocation32_spill] sm:$0xff] %v2206_v16  ;;  %v598_v20 = vld [vmem:[#allocation2 + $0x80] sm:$0xff] }
 0x262   :  { %913 = vmatpush.msrb.mxu0 %v2197_v22  ;;  %933 = vmatpush.msrb.mxu1 %v2200_v24 }
 0x263   :  { %953 = vmatpush.msrb.mxu2 %v2203_v26  ;;  %973 = vmatpush.msrb.mxu3 %v2206_v16  ;;  %v601_v16 = vld [vmem:[#allocation2 + $0x98] sm:$0xff] }
 0x2bf   :  { %v619_v13 = vpop.f32.mrf.mxu0  ;;  %v639_v21 = vpop.f32.mrf.mxu1 }
 0x2c0   :  { %v620_v11 = vadd.f32 %v619_v13, %v598_v20  ;;  %v640_v10 = vadd.f32 %v639_v21, %v599_v14 }
 0x2c2   :  { %v1219_v9 = vmul.f32 -1.442695, %v620_v11  ;;  %v1220_v22 = vmul.f32 -1.442695, %v640_v10 }
 0x2c4   :  { %1296 = vpow2.f32 %v1219_v9 }
 0x2c5   :  { %1298 = vpow2.f32 %v1220_v22 }
 0x2c6   :  { %v659_v24 = vpop.f32.mrf.mxu2  ;;  %v679_v32 = vpop.f32.mrf.mxu3 }
 0x2c7   :  { %v660_v56 = vadd.f32 %v659_v24, %v600_v6  ;;  %v680_v11 = vadd.f32 %v679_v32, %v601_v16 }
 0x2c9   :  { %v1221_v47 = vmul.f32 -1.442695, %v660_v56 }
 0x2ca   :  { %v1297_v40 = vpop.eup %1296 }
 0x2cb   :  { %v1299_v26 = vpop.eup %1298  ;;  %v685_v34 = vadd.f32 1.0, %v1297_v40  ;;  %1300 = vpow2.f32 %v1221_v47 }
 0x2cc   :  { %v704_v33 = vadd.f32 1.0, %v1299_v26 }
 0x2cd   :  { %1302 = vrcp.f32 %v685_v34  ;;  %v697_v56 = vand.u32 2147483648, %v685_v34  ;;  %v695_v47 = vand.u32 2147483647, %v685_v34  ;;  %vm691_vm14 = vweird.f32 %v685_v34 }
 0x2ce   :  { %1304 = vrcp.f32 %v704_v33  ;;  %v716_v22 = vand.u32 2147483648, %v704_v33  ;;  %v714_v26 = vand.u32 2147483647, %v704_v33  ;;  %vm710_vm15 = vweird.f32 %v704_v33 }
 0x2cf   :  { %v698_v32 = vor.u32 1.1754944e-38, %v697_v56  ;;  %vm696_vm2 = vcmp.eq.f32.partialorder %v695_v47, 8.507059e+37 }
 0x2d0   :  { %vm715_vm3 = vcmp.eq.f32.partialorder %v714_v26, 8.507059e+37 }
 0x2d1   :  { %v1301_v30 = vpop.eup %1300 }
 0x2d2   :  { %v723_v13 = vadd.f32 1.0, %v1301_v30 }
 0x2d3   :  { %v1303_v14 = vpop.eup %1302 }
 0x2d4   :  { %v1305_v10 = vpop.eup %1304  ;;  %v687_v9 = vmul.f32 %v1303_v14, %v685_v34  ;;  %1306 = vrcp.f32 %v723_v13  ;;  %vm692_vm12 = vweird.f32 %v1303_v14  ;;  %v735_v56 = vand.u32 2147483648, %v723_v13 }
 0x2d5   :  { %v706_v20 = vmul.f32 %v1305_v10, %v704_v33  ;;  %1308 = vtanh.f32 %v680_v11  ;;  %vm711_vm13 = vweird.f32 %v1305_v10  ;;  %vm693_vm0 = vmor %vm691_vm14, %vm692_vm12  ;;  %vm729_vm5 = vweird.f32 %v723_v13 }
 0x2d6   :  { %v688_v21 = vsub.f32 1.0, %v687_v9  ;;  %vm712_vm1 = vmor %vm710_vm15, %vm711_vm13  ;;  %v717_v9 = vor.u32 1.1754944e-38, %v716_v22  ;;  %v736_v22 = vor.u32 1.1754944e-38, %v735_v56 }
 0x2d7   :  { %v707_v6 = vsub.f32 1.0, %v706_v20 }
 0x2d8   :  { %v689_v40 = vmul.f32 %v1303_v14, %v688_v21 }
 0x2d9   :  { %v708_v24 = vmul.f32 %v1305_v10, %v707_v6 }
 0x2da   :  { %v1307_v44 = vpop.eup %1306  ;;  %v690_v2 = vadd.f32 %v1303_v14, %v689_v40 }
 0x2db   :  { %v725_v30 = vmul.f32 %v1307_v44, %v723_v13  ;;  %v709_v16 = vadd.f32 %v1305_v10, %v708_v24  ;;  %v1309_v11 = vpop.eup %1308  ;;  %vm730_vm4 = vweird.f32 %v1307_v44 }
 0x2dc   :  { %v694_v20 = vsel %vm693_vm0, %v1303_v14, %v690_v2  ;;  %v733_v2 = vand.u32 2147483647, %v723_v13  ;;  %vm731_vm6 = vmor %vm729_vm5, %vm730_vm4 }
 0x2dd   :  { %v726_v54 = vsub.f32 1.0, %v725_v30  ;;  %v699_v21 = vsel %vm696_vm2, %v698_v32, %v694_v20  ;;  %v713_v3 = vsel %vm712_vm1, %v1305_v10, %v709_v16 }
 0x2de   :  { %v718_v6 = vsel %vm715_vm3, %v717_v9, %v713_v3  ;;  %v741_v52 = vmul.f32 %v1309_v11, %v699_v21  ;;  %vm734_vm7 = vcmp.eq.f32.partialorder %v733_v2, 8.507059e+37 }
 0x2df   :  { %v740_v41 = vmul.f32 %v718_v6, %v2066_v12  ;;  %v727_v40 = vmul.f32 %v1307_v44, %v726_v54  ;;  %v746_v12 = vld [vmem:[#allocation2 + $0xa0] sm:$0xff] }
 0x2e1   :  { %v2210_v34 = vadd.f32 %v741_v52, %v740_v41  ;;  %v728_v33 = vadd.f32 %v1307_v44, %v727_v40 }
 0x2e3   :  { %1310 = vtanh.f32 %v2210_v34  ;;  %v732_v14 = vsel %vm731_vm6, %v1307_v44, %v728_v33  ;;  %v749_v44 = vld [vmem:[#allocation2 + $0xb8] sm:$0xff] }
 0x2e4   :  { %v737_v47 = vsel %vm734_vm7, %v736_v22, %v732_v14 }
 0x2e9   :  { %v1311_v10 = vpop.eup %1310 }
 0x2ea   :  { %v744_v3 = vmul.f32 %v1311_v10, %v737_v47 }
 0x2ec   :  { %766 = vmatmul.f32.vlgmr.msra.gmra.mxu0 %v744_v3  ;;  %786 = vmatmul.f32.vlgmr.msra.gmra.mxu1 %v744_v3 }
 0x2ed   :  { %806 = vmatmul.f32.vlgmr.msra.gmra.mxu2 %v744_v3  ;;  %826 = vmatmul.f32.vlgmr.msra.gmra.mxu3 %v744_v3 }
 0x2ee   :  { %1046 = vmatpush.msra.mxu0 %v1949_v45  ;;  %1066 = vmatpush.msra.mxu1 %v1952_v57  ;;  %v2499_v45 = vld [vmem:[#allocation11_spill] sm:$0xff]  ;;  %v2500_v57 = vld [vmem:[#allocation12_spill] sm:$0xff] }
 0x2ef   :  { %1086 = vmatpush.msra.mxu2 %v1955_v42  ;;  %1106 = vmatpush.msra.mxu3 %v2072_v49  ;;  %v2501_v42 = vld [vmem:[#allocation13_spill] sm:$0xff]  ;;  %v747_v49 = vld [vmem:[#allocation2 + $0xa8] sm:$0xff] }
 0x2f0   :  { %1047 = vmatpush.msra.mxu0 %v1959_v46  ;;  %1067 = vmatpush.msra.mxu1 %v1962_v53  ;;  %v2502_v46 = vld [vmem:[#allocation14_spill] sm:$0xff]  ;;  %v2503_v53 = vld [vmem:[#allocation15_spill] sm:$0xff] }
 0x2f1   :  { %1087 = vmatpush.msra.mxu2 %v1965_v50  ;;  %1107 = vmatpush.msra.mxu3 %v2078_v25  ;;  %v2504_v50 = vld [vmem:[#allocation16_spill] sm:$0xff] }
 0x2f2   :  { %1048 = vmatpush.msra.mxu0 %v1969_v55  ;;  %1068 = vmatpush.msra.mxu1 %v1972_v58  ;;  %v2505_v55 = vld [vmem:[#allocation17_spill] sm:$0xff]  ;;  %v2506_v58 = vld [vmem:[#allocation18_spill] sm:$0xff] }
 0x2f3   :  { %1088 = vmatpush.msra.mxu2 %v1975_v17  ;;  %1108 = vmatpush.msra.mxu3 %v2084_v28  ;;  %v2507_v17 = vld [vmem:[#allocation20_spill] sm:$0xff] }
 0x2f4   :  { %1049 = vmatpush.msra.mxu0 %v1979_v1  ;;  %1069 = vmatpush.msra.mxu1 %v1982_v61  ;;  %v2508_v1 = vld [vmem:[#allocation21_spill] sm:$0xff]  ;;  %v2509_v61 = vld [vmem:[#allocation19_spill] sm:$0xff] }
 0x2f5   :  { %1089 = vmatpush.msra.mxu2 %v1985_v19  ;;  %1109 = vmatpush.msra.mxu3 %v2090_v29  ;;  %v2510_v19 = vld [vmem:[#allocation37_spill] sm:$0xff] }
 0x2f6   :  { %1050 = vmatpush.msra.mxu0 %v1989_v63  ;;  %1070 = vmatpush.msra.mxu1 %v1992_v39  ;;  %v2511_v63 = vld [vmem:[#allocation22_spill] sm:$0xff]  ;;  %v2512_v39 = vld [vmem:[#allocation23_spill] sm:$0xff] }
 0x2f7   :  { %1090 = vmatpush.msra.mxu2 %v1995_v23  ;;  %1110 = vmatpush.msra.mxu3 %v2096_v43  ;;  %v2513_v23 = vld [vmem:[#allocation24_spill] sm:$0xff] }
 0x2f8   :  { %1051 = vmatpush.msra.mxu0 %v1999_v37  ;;  %1071 = vmatpush.msra.mxu1 %v2002_v36  ;;  %v2514_v37 = vld [vmem:[#allocation41_spill] sm:$0xff] }
 0x2f9   :  { %1091 = vmatpush.msra.mxu2 %v2005_v27  ;;  %1111 = vmatpush.msra.mxu3 %v2102_v59  ;;  %v2515_v36 = vld [vmem:[#allocation25_spill] sm:$0xff]  ;;  %v2516_v27 = vld [vmem:[#allocation26_spill] sm:$0xff] }
 0x2fa   :  { %1052 = vmatpush.msra.mxu0 %v2009_v0  ;;  %1072 = vmatpush.msra.mxu1 %v2012_v15  ;;  %v2517_v0 = vld [vmem:[#allocation27_spill] sm:$0xff]  ;;  %v2518_v15 = vld [vmem:[#allocation42_spill] sm:$0xff] }
 0x2fb   :  { %1092 = vmatpush.msra.mxu2 %v2015_v31  ;;  %1112 = vmatpush.msra.mxu3 %v2108_v38  ;;  %v2519_v31 = vld [vmem:[#allocation28_spill] sm:$0xff] }
 0x2fc   :  { %1053 = vmatpush.msra.mxu0 %v2019_v62  ;;  %1073 = vmatpush.msra.mxu1 %v2022_v48  ;;  %v2520_v62 = vld [vmem:[#allocation29_spill] sm:$0xff]  ;;  %v2521_v48 = vld [vmem:[#allocation30_spill] sm:$0xff] }
 0x2fd   :  { %1093 = vmatpush.msra.mxu2 %v2025_v35  ;;  %1113 = vmatpush.msra.mxu3 %v2114_v4  ;;  %v2522_v35 = vld [vmem:[#allocation43_spill] sm:$0xff]  ;;  %v748_v4 = vld [vmem:[#allocation2 + $0xb0] sm:$0xff] }
 0x2fe   :  { %1054 = vmatpush.msra.mxu0 %v2029_v18  ;;  %1074 = vmatpush.msra.mxu1 %v2032_v51  ;;  %v2523_v18 = vld [vmem:[#allocation31_spill] sm:$0xff]  ;;  %v2524_v51 = vld [vmem:[#allocation32_spill] sm:$0xff] }
 0x2ff   :  { %1094 = vmatpush.msra.mxu2 %v2119_v7  ;;  %1114 = vmatpush.msra.mxu3 %v2122_v5 }
 0x300   :  { %1055 = vmatpush.msra.mxu0 %v2125_v60  ;;  %1075 = vmatpush.msra.mxu1 %v2128_v8 }
 0x301   :  { %1095 = vmatpush.msra.mxu2 %v2499_v45  ;;  %1115 = vmatpush.msra.mxu3 %v2500_v57 }
 0x302   :  { %1056 = vmatpush.msra.mxu0 %v2501_v42  ;;  %1076 = vmatpush.msra.mxu1 %v2502_v46 }
 0x303   :  { %1096 = vmatpush.msra.mxu2 %v2503_v53  ;;  %1116 = vmatpush.msra.mxu3 %v2504_v50 }
 0x304   :  { %1057 = vmatpush.msra.mxu0 %v2505_v55  ;;  %1077 = vmatpush.msra.mxu1 %v2506_v58 }
 0x305   :  { %1097 = vmatpush.msra.mxu2 %v2507_v17  ;;  %1117 = vmatpush.msra.mxu3 %v2508_v1 }
 0x306   :  { %1058 = vmatpush.msra.mxu0 %v2509_v61  ;;  %1078 = vmatpush.msra.mxu1 %v2510_v19 }
 0x307   :  { %1098 = vmatpush.msra.mxu2 %v2511_v63  ;;  %1118 = vmatpush.msra.mxu3 %v2512_v39 }
 0x308   :  { %1059 = vmatpush.msra.mxu0 %v2513_v23  ;;  %1079 = vmatpush.msra.mxu1 %v2514_v37 }
 0x309   :  { %1099 = vmatpush.msra.mxu2 %v2515_v36  ;;  %1119 = vmatpush.msra.mxu3 %v2516_v27 }
 0x30a   :  { %1060 = vmatpush.msra.mxu0 %v2517_v0  ;;  %1080 = vmatpush.msra.mxu1 %v2518_v15 }
 0x30b   :  { %1100 = vmatpush.msra.mxu2 %v2519_v31  ;;  %1120 = vmatpush.msra.mxu3 %v2520_v62  ;;  %v895_v31 = vld [vmem:[#allocation2 + $0xc8] sm:$0xff] }
 0x30c   :  { %1061 = vmatpush.msra.mxu0 %v2521_v48  ;;  %1081 = vmatpush.msra.mxu1 %v2522_v35 }
 0x30d   :  { %1101 = vmatpush.msra.mxu2 %v2523_v18  ;;  %1121 = vmatpush.msra.mxu3 %v2524_v51 }
 0x369   :  { %v767_v25 = vpop.f32.mrf.mxu0  ;;  %v787_v28 = vpop.f32.mrf.mxu1 }
 0x36a   :  { %v768_v29 = vadd.f32 %v767_v25, %v746_v12  ;;  %v788_v43 = vadd.f32 %v787_v28, %v747_v49  ;;  %v896_v49 = vld [vmem:[#allocation2 + $0xd0] sm:$0xff] }
 0x36c   :  { %v1222_v59 = vmul.f32 -1.442695, %v768_v29  ;;  %v1223_v38 = vmul.f32 -1.442695, %v788_v43 }
 0x36e   :  { %1312 = vpow2.f32 %v1222_v59 }
 0x36f   :  { %1314 = vpow2.f32 %v1223_v38 }
 0x370   :  { %v807_v7 = vpop.f32.mrf.mxu2  ;;  %v827_v13 = vpop.f32.mrf.mxu3 }
 0x371   :  { %v808_v5 = vadd.f32 %v807_v7, %v748_v4  ;;  %v828_v32 = vadd.f32 %v827_v13, %v749_v44  ;;  %v897_v7 = vld [vmem:[#allocation2 + $0xd8] sm:$0xff] }
 0x373   :  { %v1224_v60 = vmul.f32 -1.442695, %v808_v5 }
 0x374   :  { %v1313_v8 = vpop.eup %1312 }
 0x375   :  { %v1315_v41 = vpop.eup %1314  ;;  %v833_v52 = vadd.f32 1.0, %v1313_v8  ;;  %1316 = vpow2.f32 %v1224_v60 }
 0x376   :  { %v852_v54 = vadd.f32 1.0, %v1315_v41 }
 0x377   :  { %1318 = vrcp.f32 %v833_v52  ;;  %v845_v6 = vand.u32 2147483648, %v833_v52  ;;  %v843_v56 = vand.u32 2147483647, %v833_v52  ;;  %vm839_vm10 = vweird.f32 %v833_v52 }
 0x378   :  { %1320 = vrcp.f32 %v852_v54  ;;  %v864_v40 = vand.u32 2147483648, %v852_v54  ;;  %v862_v14 = vand.u32 2147483647, %v852_v54  ;;  %vm858_vm11 = vweird.f32 %v852_v54 }
 0x379   :  { %v846_v3 = vor.u32 1.1754944e-38, %v845_v6  ;;  %vm844_vm14 = vcmp.eq.f32.partialorder %v843_v56, 8.507059e+37 }
 0x37a   :  { %v865_v57 = vor.u32 1.1754944e-38, %v864_v40  ;;  %vm863_vm15 = vcmp.eq.f32.partialorder %v862_v14, 8.507059e+37 }
 0x37b   :  { %v1317_v24 = vpop.eup %1316 }
 0x37c   :  { %v871_v26 = vadd.f32 1.0, %v1317_v24 }
 0x37d   :  { %v1319_v30 = vpop.eup %1318 }
 0x37e   :  { %v1321_v16 = vpop.eup %1320  ;;  %v835_v9 = vmul.f32 %v1319_v30, %v833_v52  ;;  %1322 = vrcp.f32 %v871_v26  ;;  %vm840_vm8 = vweird.f32 %v1319_v30  ;;  %v883_v39 = vand.u32 2147483648, %v871_v26 }
 0x37f   :  { %v854_v20 = vmul.f32 %v1321_v16, %v852_v54  ;;  %1324 = vtanh.f32 %v828_v32  ;;  %vm859_vm9 = vweird.f32 %v1321_v16  ;;  %vm841_vm12 = vmor %vm839_vm10, %vm840_vm8  ;;  %vm877_vm1 = vweird.f32 %v871_v26 }
 0x380   :  { %v836_v11 = vsub.f32 1.0, %v835_v9  ;;  %vm860_vm13 = vmor %vm858_vm11, %vm859_vm9  ;;  %v881_v23 = vand.u32 2147483647, %v871_v26  ;;  %v884_v36 = vor.u32 1.1754944e-38, %v883_v39 }
 0x381   :  { %v855_v21 = vsub.f32 1.0, %v854_v20 }
 0x382   :  { %v837_v33 = vmul.f32 %v1319_v30, %v836_v11  ;;  %vm882_vm3 = vcmp.eq.f32.partialorder %v881_v23, 8.507059e+37  ;;  %v1043_v23 = vld [vmem:[#allocation2 + $0xe8] sm:$0xff] }
 0x383   :  { %v856_v2 = vmul.f32 %v1321_v16, %v855_v21 }
 0x384   :  { %v1323_v22 = vpop.eup %1322  ;;  %v838_v10 = vadd.f32 %v1319_v30, %v837_v33 }
 0x385   :  { %v873_v47 = vmul.f32 %v1323_v22, %v871_v26  ;;  %v857_v45 = vadd.f32 %v1321_v16, %v856_v2  ;;  %v1325_v46 = vpop.eup %1324  ;;  %vm878_vm0 = vweird.f32 %v1323_v22 }
 0x386   :  { %v842_v42 = vsel %vm841_vm12, %v1319_v30, %v838_v10  ;;  %vm879_vm2 = vmor %vm877_vm1, %vm878_vm0 }
 0x387   :  { %v874_v53 = vsub.f32 1.0, %v873_v47  ;;  %v847_v50 = vsel %vm844_vm14, %v846_v3, %v842_v42  ;;  %v861_v55 = vsel %vm860_vm13, %v1321_v16, %v857_v45 }
 0x388   :  { %v866_v58 = vsel %vm863_vm15, %v865_v57, %v861_v55  ;;  %v889_v17 = vmul.f32 %v1325_v46, %v847_v50 }
 0x389   :  { %v888_v1 = vmul.f32 %v866_v58, %v2210_v34  ;;  %v875_v61 = vmul.f32 %v1323_v22, %v874_v53  ;;  %v894_v34 = vld [vmem:[#allocation2 + $0xc0] sm:$0xff] }
 0x38b   :  { %v2278_v19 = vadd.f32 %v889_v17, %v888_v1  ;;  %v876_v63 = vadd.f32 %v1323_v22, %v875_v61 }
 0x38d   :  { %1326 = vtanh.f32 %v2278_v19  ;;  %v880_v37 = vsel %vm879_vm2, %v1323_v22, %v876_v63 }
 0x38e   :  { %v885_v0 = vsel %vm882_vm3, %v884_v36, %v880_v37 }
 0x393   :  { %v1327_v27 = vpop.eup %1326 }
 0x394   :  { %v892_v15 = vmul.f32 %v1327_v27, %v885_v0 }
 0x396   :  { %914 = vmatmul.f32.vlgmr.msrb.gmra.mxu0 %v892_v15  ;;  %934 = vmatmul.f32.vlgmr.msrb.gmra.mxu1 %v892_v15 }
 0x397   :  { %954 = vmatmul.f32.vlgmr.msrb.gmra.mxu2 %v892_v15  ;;  %974 = vmatmul.f32.vlgmr.msrb.gmra.mxu3 %v892_v15 }
 0x413   :  { %v915_v62 = vpop.f32.mrf.mxu0  ;;  %v935_v48 = vpop.f32.mrf.mxu1 }
 0x414   :  { %v916_v35 = vadd.f32 %v915_v62, %v894_v34  ;;  %v936_v18 = vadd.f32 %v935_v48, %v895_v31  ;;  %v1044_v31 = vld [vmem:[#allocation2 + $0xf0] sm:$0xff] }
 0x416   :  { %v1225_v51 = vmul.f32 -1.442695, %v916_v35  ;;  %v1226_v12 = vmul.f32 -1.442695, %v936_v18 }
 0x418   :  { %1328 = vpow2.f32 %v1225_v51 }
 0x419   :  { %1330 = vpow2.f32 %v1226_v12 }
 0x41a   :  { %v955_v25 = vpop.f32.mrf.mxu2  ;;  %v975_v5 = vpop.f32.mrf.mxu3 }
 0x41b   :  { %v956_v28 = vadd.f32 %v955_v25, %v896_v49  ;;  %v976_v52 = vadd.f32 %v975_v5, %v897_v7  ;;  %v1045_v25 = vld [vmem:[#allocation2 + $0xf8] sm:$0xff] }
 0x41d   :  { %v1227_v29 = vmul.f32 -1.442695, %v956_v28 }
 0x41e   :  { %v1329_v43 = vpop.eup %1328 }
 0x41f   :  { %v1331_v59 = vpop.eup %1330  ;;  %v981_v38 = vadd.f32 1.0, %v1329_v43  ;;  %1332 = vpow2.f32 %v1227_v29 }
 0x420   :  { %v1000_v4 = vadd.f32 1.0, %v1331_v59 }
 0x421   :  { %1334 = vrcp.f32 %v981_v38  ;;  %v993_v30 = vand.u32 2147483648, %v981_v38  ;;  %v991_v9 = vand.u32 2147483647, %v981_v38  ;;  %vm987_vm6 = vweird.f32 %v981_v38 }
 0x422   :  { %1336 = vrcp.f32 %v1000_v4  ;;  %v1012_v32 = vand.u32 2147483648, %v1000_v4  ;;  %v1010_v11 = vand.u32 2147483647, %v1000_v4  ;;  %vm1006_vm7 = vweird.f32 %v1000_v4 }
 0x423   :  { %v994_v33 = vor.u32 1.1754944e-38, %v993_v30  ;;  %vm992_vm10 = vcmp.eq.f32.partialorder %v991_v9, 8.507059e+37 }
 0x424   :  { %v1013_v2 = vor.u32 1.1754944e-38, %v1012_v32  ;;  %vm1011_vm11 = vcmp.eq.f32.partialorder %v1010_v11, 8.507059e+37 }
 0x425   :  { %v1333_v60 = vpop.eup %1332 }
 0x426   :  { %v1019_v8 = vadd.f32 1.0, %v1333_v60 }
 0x427   :  { %v1335_v41 = vpop.eup %1334 }
 0x428   :  { %v1337_v54 = vpop.eup %1336  ;;  %v983_v44 = vmul.f32 %v1335_v41, %v981_v38  ;;  %1338 = vrcp.f32 %v1019_v8  ;;  %vm988_vm4 = vweird.f32 %v1335_v41  ;;  %v1031_v55 = vand.u32 2147483648, %v1019_v8 }
 0x429   :  { %v1002_v13 = vmul.f32 %v1337_v54, %v1000_v4  ;;  %1340 = vtanh.f32 %v976_v52  ;;  %vm1007_vm5 = vweird.f32 %v1337_v54  ;;  %vm989_vm8 = vmor %vm987_vm6, %vm988_vm4  ;;  %vm1025_vm13 = vweird.f32 %v1019_v8 }
 0x42a   :  { %v984_v24 = vsub.f32 1.0, %v983_v44  ;;  %vm1008_vm9 = vmor %vm1006_vm7, %vm1007_vm5  ;;  %v1029_v58 = vand.u32 2147483647, %v1019_v8  ;;  %v1032_v1 = vor.u32 1.1754944e-38, %v1031_v55 }
 0x42b   :  { %v1003_v26 = vsub.f32 1.0, %v1002_v13 }
 0x42c   :  { %v985_v16 = vmul.f32 %v1335_v41, %v984_v24  ;;  %vm1030_vm15 = vcmp.eq.f32.partialorder %v1029_v58, 8.507059e+37 }
 0x42d   :  { %v1004_v20 = vmul.f32 %v1337_v54, %v1003_v26 }
 0x42e   :  { %v1339_v21 = vpop.eup %1338  ;;  %v986_v6 = vadd.f32 %v1335_v41, %v985_v16 }
 0x42f   :  { %v1021_v40 = vmul.f32 %v1339_v21, %v1019_v8  ;;  %v1005_v56 = vadd.f32 %v1337_v54, %v1004_v20  ;;  %v1341_v22 = vpop.eup %1340  ;;  %vm1026_vm12 = vweird.f32 %v1339_v21 }
 0x430   :  { %v990_v14 = vsel %vm989_vm8, %v1335_v41, %v986_v6  ;;  %vm1027_vm14 = vmor %vm1025_vm13, %vm1026_vm12 }
 0x431   :  { %v1022_v10 = vsub.f32 1.0, %v1021_v40  ;;  %v995_v47 = vsel %vm992_vm10, %v994_v33, %v990_v14  ;;  %v1009_v3 = vsel %vm1008_vm9, %v1337_v54, %v1005_v56 }
 0x432   :  { %v1014_v45 = vsel %vm1011_vm11, %v1013_v2, %v1009_v3  ;;  %v1037_v57 = vmul.f32 %v1341_v22, %v995_v47 }
 0x433   :  { %v1036_v42 = vmul.f32 %v1014_v45, %v2278_v19  ;;  %v1023_v46 = vmul.f32 %v1339_v21, %v1022_v10  ;;  %v1042_v19 = vld [vmem:[#allocation2 + $0xe0] sm:$0xff] }
 0x435   :  { %v2282_v53 = vadd.f32 %v1037_v57, %v1036_v42  ;;  %v1024_v50 = vadd.f32 %v1339_v21, %v1023_v46 }
 0x437   :  { %1342 = vtanh.f32 %v2282_v53  ;;  %v1028_v17 = vsel %vm1027_vm14, %v1339_v21, %v1024_v50 }
 0x438   :  { %v1033_v63 = vsel %vm1030_vm15, %v1032_v1, %v1028_v17 }
 0x43d   :  { %v1343_v61 = vpop.eup %1342 }
 0x43e   :  { %v1040_v39 = vmul.f32 %v1343_v61, %v1033_v63 }
 0x440   :  { %1062 = vmatmul.f32.vlgmr.msra.gmra.mxu0 %v1040_v39  ;;  %1082 = vmatmul.f32.vlgmr.msra.gmra.mxu1 %v1040_v39 }
 0x441   :  { %1102 = vmatmul.f32.vlgmr.msra.gmra.mxu2 %v1040_v39  ;;  %1122 = vmatmul.f32.vlgmr.msra.gmra.mxu3 %v1040_v39 }
 0x4bd   :  { %v1063_v37 = vpop.f32.mrf.mxu0  ;;  %v1083_v36 = vpop.f32.mrf.mxu1 }
 0x4be   :  { %v1064_v27 = vadd.f32 %v1063_v37, %v1042_v19  ;;  %v1084_v0 = vadd.f32 %v1083_v36, %v1043_v23 }
 0x4c0   :  { %v1228_v15 = vmul.f32 -1.442695, %v1064_v27  ;;  %v1229_v34 = vmul.f32 -1.442695, %v1084_v0 }
 0x4c2   :  { %1344 = vpow2.f32 %v1228_v15 }
 0x4c3   :  { %1346 = vpow2.f32 %v1229_v34 }
 0x4c4   :  { %v1103_v62 = vpop.f32.mrf.mxu2  ;;  %v1123_v28 = vpop.f32.mrf.mxu3 }
 0x4c5   :  { %v1104_v48 = vadd.f32 %v1103_v62, %v1044_v31  ;;  %v1124_v38 = vadd.f32 %v1123_v28, %v1045_v25 }
 0x4c7   :  { %v1230_v35 = vmul.f32 -1.442695, %v1104_v48 }
 0x4c8   :  { %v1345_v18 = vpop.eup %1344 }
 0x4c9   :  { %v1347_v51 = vpop.eup %1346  ;;  %v1129_v12 = vadd.f32 1.0, %v1345_v18  ;;  %1348 = vpow2.f32 %v1230_v35 }
 0x4ca   :  { %v1148_v49 = vadd.f32 1.0, %v1347_v51 }
 0x4cb   :  { %1350 = vrcp.f32 %v1129_v12  ;;  %v1141_v41 = vand.u32 2147483648, %v1129_v12  ;;  %v1139_v44 = vand.u32 2147483647, %v1129_v12  ;;  %vm1135_vm2 = vweird.f32 %v1129_v12 }
 0x4cc   :  { %1352 = vrcp.f32 %v1148_v49  ;;  %v1160_v52 = vand.u32 2147483648, %v1148_v49  ;;  %v1158_v24 = vand.u32 2147483647, %v1148_v49  ;;  %vm1154_vm3 = vweird.f32 %v1148_v49 }
 0x4cd   :  { %v1142_v16 = vor.u32 1.1754944e-38, %v1141_v41  ;;  %vm1140_vm6 = vcmp.eq.f32.partialorder %v1139_v44, 8.507059e+37 }
 0x4ce   :  { %v1161_v20 = vor.u32 1.1754944e-38, %v1160_v52  ;;  %vm1159_vm7 = vcmp.eq.f32.partialorder %v1158_v24, 8.507059e+37 }
 0x4cf   :  { %v1349_v29 = vpop.eup %1348 }
 0x4d0   :  { %v1167_v43 = vadd.f32 1.0, %v1349_v29 }
 0x4d1   :  { %v1351_v59 = vpop.eup %1350 }
 0x4d2   :  { %v1353_v4 = vpop.eup %1352  ;;  %v1131_v7 = vmul.f32 %v1351_v59, %v1129_v12  ;;  %1354 = vrcp.f32 %v1167_v43  ;;  %vm1136_vm0 = vweird.f32 %v1351_v59  ;;  %v1179_v3 = vand.u32 2147483648, %v1167_v43 }
 0x4d3   :  { %v1150_v5 = vmul.f32 %v1353_v4, %v1148_v49  ;;  %1356 = vtanh.f32 %v1124_v38  ;;  %vm1155_vm1 = vweird.f32 %v1353_v4  ;;  %vm1137_vm4 = vmor %vm1135_vm2, %vm1136_vm0  ;;  %vm1173_vm9 = vweird.f32 %v1167_v43 }
 0x4d4   :  { %v1132_v60 = vsub.f32 1.0, %v1131_v7  ;;  %vm1156_vm5 = vmor %vm1154_vm3, %vm1155_vm1  ;;  %v1177_v45 = vand.u32 2147483647, %v1167_v43  ;;  %v1180_v42 = vor.u32 1.1754944e-38, %v1179_v3 }
 0x4d5   :  { %v1151_v8 = vsub.f32 1.0, %v1150_v5 }
 0x4d6   :  { %v1133_v54 = vmul.f32 %v1351_v59, %v1132_v60  ;;  %vm1178_vm11 = vcmp.eq.f32.partialorder %v1177_v45, 8.507059e+37 }
 0x4d7   :  { %v1152_v13 = vmul.f32 %v1353_v4, %v1151_v8 }
 0x4d8   :  { %v1355_v26 = vpop.eup %1354  ;;  %v1134_v30 = vadd.f32 %v1351_v59, %v1133_v54 }
 0x4d9   :  { %v1169_v32 = vmul.f32 %v1355_v26, %v1167_v43  ;;  %v1153_v9 = vadd.f32 %v1353_v4, %v1152_v13  ;;  %v1357_v21 = vpop.eup %1356  ;;  %vm1174_vm8 = vweird.f32 %v1355_v26 }
 0x4da   :  { %v1138_v11 = vsel %vm1137_vm4, %v1351_v59, %v1134_v30  ;;  %vm1175_vm10 = vmor %vm1173_vm9, %vm1174_vm8 }
 0x4db   :  { %v1170_v6 = vsub.f32 1.0, %v1169_v32  ;;  %v1143_v40 = vsel %vm1140_vm6, %v1142_v16, %v1138_v11  ;;  %v1157_v33 = vsel %vm1156_vm5, %v1353_v4, %v1153_v9 }
 0x4dc   :  { %v1162_v56 = vsel %vm1159_vm7, %v1161_v20, %v1157_v33  ;;  %v1185_v2 = vmul.f32 %v1357_v21, %v1143_v40 }
 0x4dd   :  { %v1184_v14 = vmul.f32 %v1162_v56, %v2282_v53  ;;  %v1171_v22 = vmul.f32 %v1355_v26, %v1170_v6 }
 0x4df   :  { %v1186_v10 = vadd.f32 %v1185_v2, %v1184_v14  ;;  %v1172_v47 = vadd.f32 %v1355_v26, %v1171_v22 }
 0x4e1   :  { %1358 = vtanh.f32 %v1186_v10  ;;  %v1176_v57 = vsel %vm1175_vm10, %v1355_v26, %v1172_v47 }
 0x4e2   :  { %v1181_v53 = vsel %vm1178_vm11, %v1180_v42, %v1176_v57 }
 0x4e7   :  { %v1359_v46 = vpop.eup %1358 }
 0x4e8   :  { %v1188_v50 = vmul.f32 %v1359_v46, %v1181_v53 }
 0x4ea   :  { %1189 = vst [vmem:[#allocation7] sm:$0xff] %v1188_v50 }
 0x4eb   :  { %1200 = dma.vmem_to_hbm [thread:$0]  %s1196_s1, 128, %s1198_s23, [#allocation4]  }
 0x4ec   :  { %1500 = dma.done.wait [#allocation4], 128  }
 0x4ed   :  { %1501 = vsyncadd [#allocation4], 4294967168 }
 0x4ee   :  { %1205 = vsyncpa [#allocation3], 1 }
 0x4ef   :  { %1206 = vsyncpa [#allocation6], 1 }
 0x4f0   :  { %1207 = vsyncpa [#allocation4], 1 }

</bundles_post_ra>
